<compile_context>
chip_gen: v5e
topology: v5e:2x2
jax: 0.10.0
libtpu: 0.0.40
codegen_flags: <defaults>
</compile_context>

<pallas_src>
import functools
import math

import jax
import jax.numpy as jnp
from jax import lax
from jax.experimental import pallas as pl
from jax.experimental.pallas import tpu as pltpu

COMPUTE_DTYPE = jnp.bfloat16


def _vmem_capacity_bytes():
    try:
        info = pltpu.get_tpu_info()
        cap = getattr(info, "vmem_capacity_bytes", None)
        if cap:
            return int(cap)
    except Exception:
        pass
    return 64 * 1024 * 1024          # conservative fallback (v7x-sized)


_VMEM_CAP = _vmem_capacity_bytes()
VMEM_LIMIT = int(_VMEM_CAP * 0.75)    # ~96 MiB on v5e/v6e (128 MiB), ~48 MiB on v7x (64 MiB)


def _strip_bytes(th, W, cin, cout):
    bf = 2
    in_blk = th * W * cin * bf
    out_blk = th * W * cout * bf
    halo_rows = 2 * W * cin * bf
    scratch = (th + 2) * (W + 2) * cin * bf
    acc = th * W * cout * 4
    patch = th * W * 3 * cin * bf
    weights = 3 * 3 * cin * cout * bf
    # inputs/outputs double-buffered by the pipeline; scratch/temps single-buffered;
    # one extra out_blk of slack for an optional residual input / f32 temporaries.
    return (2 * (in_blk + out_blk + halo_rows) + scratch + acc + 2 * patch
            + 2 * weights + 2 * out_blk)


def _pick_th(H, W, cin, cout):
    """Largest divisor of H whose strip footprint fits ~50% of the VMEM limit."""
    budget = VMEM_LIMIT // 2
    divisors = [d for d in range(1, H + 1) if H % d == 0]
    fitting = [d for d in divisors if _strip_bytes(d, W, cin, cout) <= budget]
    th = max(fitting) if fitting else 1
    # Keep >=2 strips when the image is tall enough: gives the pipeline depth and lets
    # v7x's two TensorCores split the (B, strips) grid evenly.
    if th == H and H >= 16:
        smaller = [d for d in divisors if d <= H // 2]
        if smaller:
            th = max(smaller)
    return th


# ----------------------------------------------------------------------------
# Fused 3x3 conv kernel: bf16 in-VMEM halo (rows fetched from HBM), K=3*Cin dots,
# optional fused channel-attention input scale (folded into weights) and residual.
# ----------------------------------------------------------------------------
def _conv3x3_kernel(*refs, TH, W, cin, cout, activation, has_scale, has_res):
    idx = 0
    x_ref = refs[idx]; idx += 1          # (1, TH, W, cin) strip
    top_ref = refs[idx]; idx += 1        # (1, 1, W, cin) row above the strip
    bot_ref = refs[idx]; idx += 1        # (1, 1, W, cin) row below the strip
    w_ref = refs[idx]; idx += 1          # (3, 3*cin, cout) bf16, K index = dx*cin + c
    b_ref = refs[idx]; idx += 1          # (1, cout) f32
    scale_ref = None
    res_ref = None
    if has_scale:
        scale_ref = refs[idx]; idx += 1  # (1, cin) f32 (channel attention)
    if has_res:
        res_ref = refs[idx]; idx += 1    # (1, TH, W, cout)
    o_ref = refs[idx]; idx += 1          # (1, TH, W, cout)
    xp_ref = refs[idx]; idx += 1         # scratch (TH+2, W+2, cin) bf16

    s = pl.program_id(1)
    ns = pl.num_programs(1)

    # Build the 1-px halo in bf16.  Only the two border columns are zeroed each step
    # (cheap, megacore-safe); top/bottom halo rows come straight from HBM and are
    # masked off at the image edges.
    zero_col = jnp.zeros((TH + 2, 1, cin), xp_ref.dtype)
    xp_ref[:, 0:1, :] = zero_col
    xp_ref[:, W + 1:W + 2, :] = zero_col
    xp_ref[1:TH + 1, 1:W + 1, :] = x_ref[0]
    top_keep = (s > 0).astype(xp_ref.dtype)
    bot_keep = (s < ns - 1).astype(xp_ref.dtype)
    xp_ref[0, 1:W + 1, :] = top_ref[0, 0] * top_keep
    xp_ref[TH + 1, 1:W + 1, :] = bot_ref[0, 0] * bot_keep

    # Channel attention: fold the per-input-channel scale into the weights
    # (O(9*cin*cout) work instead of scaling the whole activation strip).
    if has_scale:
        w_s = w_ref[...].astype(jnp.float32).reshape(3, 3, cin, cout)
        w_s = w_s * scale_ref[...].reshape(1, 1, cin, 1)
        w_all = w_s.reshape(3, 3 * cin, cout).astype(w_ref.dtype)
    else:
        w_all = None

    acc = jnp.zeros((TH * W, cout), jnp.float32)
    for dy in range(3):
        patch = jnp.concatenate(
            [xp_ref[dy:dy + TH, 0:W, :],
             xp_ref[dy:dy + TH, 1:W + 1, :],
             xp_ref[dy:dy + TH, 2:W + 2, :]], axis=-1)      # (TH, W, 3*cin) bf16
        patch = patch.reshape(TH * W, 3 * cin)
        w_dy = w_all[dy] if has_scale else w_ref[dy]
        acc = acc + jnp.dot(patch, w_dy, preferred_element_type=jnp.float32)

    acc = acc + b_ref[...]
    if activation == "relu":
        acc = jnp.maximum(acc, 0.0)
    if has_res:
        acc = acc + res_ref[0].reshape(TH * W, cout).astype(jnp.float32)
    o_ref[0] = acc.reshape(TH, W, cout).astype(o_ref.dtype)


@functools.partial(jax.jit, static_argnames=("activation", "out_dtype"))
def conv3x3(x, w, b, scale=None, res=None, activation="none", out_dtype=None):
    """3x3 'same' conv with fused bias / ReLU / per-channel input scale / residual."""
    B, H, W, Cin = x.shape
    Cout = w.shape[-1]
    odt = x.dtype if out_dtype is None else out_dtype
    TH = _pick_th(H, W, Cin, Cout)
    ns = H // TH

    kernel = functools.partial(
        _conv3x3_kernel, TH=TH, W=W, cin=Cin, cout=Cout, activation=activation,
        has_scale=scale is not None, has_res=res is not None)

    strip_spec = pl.BlockSpec((1, TH, W, Cin), lambda b_, s_: (b_, s_, 0, 0))
    top_spec = pl.BlockSpec(
        (1, 1, W, Cin), lambda b_, s_: (b_, jnp.maximum(s_ * TH - 1, 0), 0, 0))
    bot_spec = pl.BlockSpec(
        (1, 1, W, Cin), lambda b_, s_: (b_, jnp.minimum(s_ * TH + TH, H - 1), 0, 0))

    in_specs = [strip_spec, top_spec, bot_spec,
                pl.BlockSpec((3, 3 * Cin, Cout), lambda b_, s_: (0, 0, 0)),
                pl.BlockSpec((1, Cout), lambda b_, s_: (0, 0))]
    args = [x, x, x, w, b]
    if scale is not None:
        in_specs.append(pl.BlockSpec((1, Cin), lambda b_, s_: (b_, 0)))
        args.append(scale)
    if res is not None:
        in_specs.append(pl.BlockSpec((1, TH, W, Cout), lambda b_, s_: (b_, s_, 0, 0)))
        args.append(res)

    return pl.pallas_call(
        kernel,
        out_shape=jax.ShapeDtypeStruct((B, H, W, Cout), odt),
        grid=(B, ns),
        in_specs=in_specs,
        out_specs=pl.BlockSpec((1, TH, W, Cout), lambda b_, s_: (b_, s_, 0, 0)),
        scratch_shapes=[pltpu.VMEM((TH + 2, W + 2, Cin), COMPUTE_DTYPE)],
        compiler_params=pltpu.CompilerParams(
            dimension_semantics=("parallel", "parallel"),
            vmem_limit_bytes=VMEM_LIMIT),
    )(*args)


# ----------------------------------------------------------------------------
# Fused DNA interaction kernel (lane-dense, 2C = 128 channels end-to-end):
#   zz = [z1 | z2].  With an anti-block-diagonal gate weight Wg (b->g12, a->g21),
#   g = sigmoid(conv(zz, Wg) + [b12|b21]) = [g12 | g21] and gated = zz*g = [z1*g12|z2*g21].
#   pair mode   -> out = gated                      (2C channels, lane dense)
#   reduce mode -> out = (res +) z1*g12 + z2*g21    (C channels)
#   with_pool   -> also accumulate the GAP of the reduced map across strips.
# ----------------------------------------------------------------------------
def _pair_gate_kernel(*refs, TH, W, C, reduce_out, with_pool, has_res, inv_hw):
    idx = 0
    z_ref = refs[idx]; idx += 1          # (1, TH, W, 2C) strip [z1 | z2]
    top_ref = refs[idx]; idx += 1        # (1, 1, W, 2C)
    bot_ref = refs[idx]; idx += 1        # (1, 1, W, 2C)
    wg_ref = refs[idx]; idx += 1         # (3, 6C, 2C) anti-block-diag gate weights
    bg_ref = refs[idx]; idx += 1         # (1, 2C) f32  [b12 | b21]
    res_ref = None
    if has_res:
        res_ref = refs[idx]; idx += 1    # (1, TH, W, C)
    o_ref = refs[idx]; idx += 1          # (1, TH, W, 2C) or (1, TH, W, C)
    pool_ref = None
    if with_pool:
        pool_ref = refs[idx]; idx += 1   # (1, C) f32 (accumulated across strips)
    xp_ref = refs[idx]; idx += 1         # scratch (TH+2, W+2, 2C) bf16

    C2 = 2 * C
    s = pl.program_id(1)
    ns = pl.num_programs(1)

    zero_col = jnp.zeros((TH + 2, 1, C2), xp_ref.dtype)
    xp_ref[:, 0:1, :] = zero_col
    xp_ref[:, W + 1:W + 2, :] = zero_col
    xp_ref[1:TH + 1, 1:W + 1, :] = z_ref[0]
    top_keep = (s > 0).astype(xp_ref.dtype)
    bot_keep = (s < ns - 1).astype(xp_ref.dtype)
    xp_ref[0, 1:W + 1, :] = top_ref[0, 0] * top_keep
    xp_ref[TH + 1, 1:W + 1, :] = bot_ref[0, 0] * bot_keep

    acc = jnp.zeros((TH * W, C2), jnp.float32)
    for dy in range(3):
        patch = jnp.concatenate(
            [xp_ref[dy:dy + TH, 0:W, :],
             xp_ref[dy:dy + TH, 1:W + 1, :],
             xp_ref[dy:dy + TH, 2:W + 2, :]], axis=-1).reshape(TH * W, 3 * C2)
        acc = acc + jnp.dot(patch, wg_ref[dy], preferred_element_type=jnp.float32)
    acc = acc + bg_ref[...]

    # sigmoid via EUP exp + approximate reciprocal (frees VPU slots)
    acc = jnp.clip(acc, -60.0, 60.0)
    g = pl.reciprocal(1.0 + jnp.exp(-acc), approx=True)      # [g12 | g21]
    gated = z_ref[0].reshape(TH * W, C2).astype(jnp.float32) * g   # [z1*g12 | z2*g21]

    if reduce_out:
        base = gated[:, :C] + gated[:, C:]
        if with_pool:
            @pl.when(s == 0)
            def _init():
                pool_ref[...] = jnp.zeros_like(pool_ref)
            pool_ref[...] = pool_ref[...] + jnp.sum(base, axis=0, keepdims=True) * inv_hw
        out = base
        if has_res:
            out = out + res_ref[0].reshape(TH * W, C).astype(jnp.float32)
        o_ref[0] = out.reshape(TH, W, C).astype(o_ref.dtype)
    else:
        o_ref[0] = gated.reshape(TH, W, C2).astype(o_ref.dtype)


@functools.partial(jax.jit, static_argnames=("reduce_out", "with_pool"))
def pair_gate(zz, wg, bg, res=None, reduce_out=False, with_pool=False):
    B, H, W, C2 = zz.shape
    C = C2 // 2
    has_res = res is not None
    TH = _pick_th(H, W, C2, C2)
    ns = H // TH

    kernel = functools.partial(
        _pair_gate_kernel, TH=TH, W=W, C=C, reduce_out=reduce_out,
        with_pool=with_pool, has_res=has_res, inv_hw=1.0 / float(H * W))

    strip_spec = pl.BlockSpec((1, TH, W, C2), lambda b_, s_: (b_, s_, 0, 0))
    top_spec = pl.BlockSpec(
        (1, 1, W, C2), lambda b_, s_: (b_, jnp.maximum(s_ * TH - 1, 0), 0, 0))
    bot_spec = pl.BlockSpec(
        (1, 1, W, C2), lambda b_, s_: (b_, jnp.minimum(s_ * TH + TH, H - 1), 0, 0))

    in_specs = [strip_spec, top_spec, bot_spec,
                pl.BlockSpec((3, 3 * C2, C2), lambda b_, s_: (0, 0, 0)),
                pl.BlockSpec((1, C2), lambda b_, s_: (0, 0))]
    args = [zz, zz, zz, wg, bg]
    if has_res:
        in_specs.append(pl.BlockSpec((1, TH, W, C), lambda b_, s_: (b_, s_, 0, 0)))
        args.append(res)

    cout = C if reduce_out else C2
    main_shape = jax.ShapeDtypeStruct((B, H, W, cout), zz.dtype)
    main_spec = pl.BlockSpec((1, TH, W, cout), lambda b_, s_: (b_, s_, 0, 0))
    if with_pool:
        out_shape = (main_shape, jax.ShapeDtypeStruct((B, C), jnp.float32))
        out_specs = (main_spec, pl.BlockSpec((1, C), lambda b_, s_: (b_, 0)))
        semantics = ("parallel", "arbitrary")    # GAP accumulates across strips
    else:
        out_shape = main_shape
        out_specs = main_spec
        semantics = ("parallel", "parallel")

    return pl.pallas_call(
        kernel,
        out_shape=out_shape,
        grid=(B, ns),
        in_specs=in_specs,
        out_specs=out_specs,
        scratch_shapes=[pltpu.VMEM((TH + 2, W + 2, C2), COMPUTE_DTYPE)],
        compiler_params=pltpu.CompilerParams(
            dimension_semantics=semantics,
            vmem_limit_bytes=VMEM_LIMIT),
    )(*args)


# ----------------------------------------------------------------------------
# Model glue (plain JAX): pixel shuffle, tiny SE matmuls.
# ----------------------------------------------------------------------------
def pixel_shuffle_nhwc(x, r):
    # PyTorch PixelShuffle semantics: input channel index = c*r*r + ry*r + rx
    B, H, W, Crr = x.shape
    C = Crr // (r * r)
    x = x.reshape(B, H, W, C, r, r)
    x = jnp.transpose(x, (0, 1, 4, 2, 5, 3))      # (B, H, ry, W, rx, C)
    return x.reshape(B, H * r, W * r, C)


def dna_block(x, p):
    # x: (B, H, W, 64) bf16
    z0 = conv3x3(x, *p["init_conv"], activation="relu")
    zz = conv3x3(z0, *p["extract_dbl"], activation="relu")            # [z1 | z2]
    zz = pair_gate(zz, *p["U_dbl"][0])
    m, pooled = pair_gate(zz, *p["U_dbl"][1], reduce_out=True, with_pool=True)
    # Squeeze-excite channel attention (GAP fused above; fc's are tiny -> plain JAX)
    attn = jax.nn.sigmoid(jnp.maximum(pooled @ p["ca_w1"], 0.0) @ p["ca_w2"])  # (B, 64)
    zmid = conv3x3(m, *p["mid_conv"], scale=attn, activation="relu")   # CA fused in weights
    tt = conv3x3(zmid, *p["extract_trp"], activation="relu")          # [t1 | t2]
    tt = pair_gate(tt, *p["U_trp"][0])
    tt = pair_gate(tt, *p["U_trp"][1])
    out = pair_gate(tt, *p["U_trp"][2], res=x, reduce_out=True)       # x + t1 + t2
    return out


def edsr_forward(x_nchw, params, up_factors):
    mean = jnp.array([0.4488, 0.4371, 0.404], jnp.float32).reshape(1, 1, 1, 3)
    x = jnp.transpose(x_nchw, (0, 2, 3, 1)).astype(jnp.float32)        # -> NHWC
    out = ((x - mean) * 255.0).astype(COMPUTE_DTYPE)
    out1 = conv3x3(out, *params["conv1"])
    # TODO(synk): out1 / block residual chain kept in bf16; validate PSNR vs f32 carry.
    out = out1
    for blk in params["trunk"]:
        out = dna_block(out, blk)
    out = conv3x3(out, *params["conv2"], res=out1)                     # + out1 fused
    for conv_p, r in zip(params["upsampling"], up_factors):
        out = conv3x3(out, *conv_p)
        out = pixel_shuffle_nhwc(out, r)
    out = conv3x3(out, *params["conv3"], out_dtype=jnp.float32)
    out = out / 255.0 + mean
    return jnp.transpose(out, (0, 3, 1, 2))                            # -> NCHW


# ----------------------------------------------------------------------------
# Deterministic synthetic parameters (mirror module shapes; weights packed for kernels)
# ----------------------------------------------------------------------------
def init_conv_params(key, cin, cout):
    kw, kb = jax.random.split(key)
    std = (2.0 / (9 * cin)) ** 0.5
    w = jax.random.normal(kw, (9, cin, cout), jnp.float32) * std
    w = w.reshape(3, 3 * cin, cout).astype(COMPUTE_DTYPE)   # row dy, K = dx*cin + c
    b = jax.random.normal(kb, (1, cout), jnp.float32) * 0.01
    return (w, b)


def _concat_conv(p1, p2):
    return (jnp.concatenate([p1[0], p2[0]], axis=-1),
            jnp.concatenate([p1[1], p2[1]], axis=-1))


def pack_gate_params(p12, p21):
    """Pack U12 / U21 convs into one anti-block-diagonal (3, 6C, 2C) gate weight.

    Input channels are [z1 | z2]; outputs are [g12 | g21] with g12 = conv(z2, W12),
    g21 = conv(z1, W21).
    """
    w12, b12 = p12
    w21, b21 = p21
    C = w12.shape[-1]
    wg = jnp.zeros((3, 6 * C, 2 * C), w12.dtype)
    for dx in range(3):
        k0 = dx * 2 * C
        wg = wg.at[:, k0 + C:k0 + 2 * C, 0:C].set(w12[:, dx * C:(dx + 1) * C, :])  # z2 -> g12
        wg = wg.at[:, k0:k0 + C, C:2 * C].set(w21[:, dx * C:(dx + 1) * C, :])      # z1 -> g21
    bg = jnp.concatenate([b12, b21], axis=-1)
    return wg, bg


def init_block_params(key, channels=64, reduction=16):
    hidden = max(channels // reduction, 4)
    keys = jax.random.split(key, 20)
    p = {}
    p["init_conv"] = init_conv_params(keys[0], channels, channels)
    p["extract_dbl"] = _concat_conv(init_conv_params(keys[1], channels, channels),
                                    init_conv_params(keys[2], channels, channels))
    p["U_dbl"] = [pack_gate_params(init_conv_params(keys[3 + i], channels, channels),
                                   init_conv_params(keys[5 + i], channels, channels))
                  for i in range(2)]
    p["ca_w1"] = jax.random.normal(keys[7], (channels, hidden), jnp.float32) * (channels ** -0.5)
    p["ca_w2"] = jax.random.normal(keys[8], (hidden, channels), jnp.float32) * (hidden ** -0.5)
    p["mid_conv"] = init_conv_params(keys[9], channels, channels)
    p["extract_trp"] = _concat_conv(init_conv_params(keys[10], channels, channels),
                                    init_conv_params(keys[11], channels, channels))
    p["U_trp"] = [pack_gate_params(init_conv_params(keys[12 + i], channels, channels),
                                   init_conv_params(keys[15 + i], channels, channels))
                  for i in range(3)]
    return p


def init_edsr_params(key, upscale_factor=2):
    keys = jax.random.split(key, 32)
    params = {}
    params["conv1"] = init_conv_params(keys[0], 3, 64)
    params["trunk"] = [init_block_params(keys[1 + i]) for i in range(16)]
    params["conv2"] = init_conv_params(keys[17], 64, 64)
    ups = []
    up_factors = []
    if upscale_factor in (2, 4):
        for i in range(int(math.log(upscale_factor, 2))):
            ups.append(init_conv_params(keys[18 + i], 64, 64 * 2 * 2))
            up_factors.append(2)
    elif upscale_factor == 3:
        ups.append(init_conv_params(keys[18], 64, 64 * 3 * 3))
        up_factors.append(3)
    params["upsampling"] = ups
    params["conv3"] = init_conv_params(keys[22], 64, 3)
    return params, tuple(up_factors)


# ----------------------------------------------------------------------------
# Pure-JAX references for unit checks (same shapes as the model -> jit cache reuse)
# ----------------------------------------------------------------------------
def _conv_ref(x, w_packed, b, scale=None, res=None, activation="none"):
    cin, cout = x.shape[-1], w_packed.shape[-1]
    w = w_packed.astype(jnp.float32).reshape(3, 3, cin, cout)
    xf = x.astype(jnp.float32)
    if scale is not None:
        xf = xf * scale.astype(jnp.float32)[:, None, None, :]
    y = lax.conv_general_dilated(xf, w, (1, 1), "SAME",
                                 dimension_numbers=("NHWC", "HWIO", "NHWC"))
    y = y + b.astype(jnp.float32).reshape(1, 1, 1, cout)
    if activation == "relu":
        y = jnp.maximum(y, 0.0)
    if res is not None:
        y = y + res.astype(jnp.float32)
    return y


def _pair_ref(zz, p12, p21, res=None, reduce_out=False, with_pool=False):
    C = zz.shape[-1] // 2
    z1 = zz[..., :C]
    z2 = zz[..., C:]
    g12 = jax.nn.sigmoid(_conv_ref(z2, *p12))
    g21 = jax.nn.sigmoid(_conv_ref(z1, *p21))
    n1 = z1.astype(jnp.float32) * g12
    n2 = z2.astype(jnp.float32) * g21
    if not reduce_out:
        return jnp.concatenate([n1, n2], axis=-1)
    base = n1 + n2
    out = base if res is None else base + res.astype(jnp.float32)
    if with_pool:
        return out, jnp.mean(base, axis=(1, 2))
    return out


def _assert_close(name, got, want, tol=0.08):
    got = jnp.asarray(got, jnp.float32)
    want = jnp.asarray(want, jnp.float32)
    err = float(jnp.max(jnp.abs(got - want) / (jnp.abs(want) + 1.0)))
    assert err < tol, f"{name}: max scaled error {err:.4f} >= {tol}"


# ----------------------------------------------------------------------------
if __name__ == "__main__":
    key = jax.random.PRNGKey(0)
    k_x, k_p, k_c = jax.random.split(key, 3)

    # --- unit checks (shapes identical to the model's, so the compiled kernels
    # are reused by the full forward pass below) -------------------------------
    kc = jax.random.split(k_c, 12)
    x64 = jax.random.normal(kc[0], (2, 16, 16, 64), jnp.float32).astype(COMPUTE_DTYPE)
    x3 = jax.random.normal(kc[1], (2, 16, 16, 3), jnp.float32).astype(COMPUTE_DTYPE)
    res64 = jax.random.normal(kc[2], (2, 16, 16, 64), jnp.float32).astype(COMPUTE_DTYPE)
    scale64 = jax.random.uniform(kc[3], (2, 64), jnp.float32, 0.2, 1.0)
    p_a = init_conv_params(kc[4], 3, 64)
    p_b = init_conv_params(kc[5], 64, 64)
    p_c = _concat_conv(init_conv_params(kc[6], 64, 64), init_conv_params(kc[7], 64, 64))
    p12 = init_conv_params(kc[8], 64, 64)
    p21 = init_conv_params(kc[9], 64, 64)
    wg, bg = pack_gate_params(p12, p21)
    zz = jax.random.normal(kc[10], (2, 16, 16, 128), jnp.float32).astype(COMPUTE_DTYPE)

    _assert_close("conv 3->64", conv3x3(x3, *p_a), _conv_ref(x3, *p_a))
    _assert_close("conv relu+scale",
                  conv3x3(x64, *p_b, scale=scale64, activation="relu"),
                  _conv_ref(x64, *p_b, scale=scale64, activation="relu"))
    _assert_close("conv residual",
                  conv3x3(x64, *p_b, res=res64), _conv_ref(x64, *p_b, res=res64))
    _assert_close("conv 64->128 relu",
                  conv3x3(x64, *p_c, activation="relu"),
                  _conv_ref(x64, *p_c, activation="relu"))
    _assert_close("pair gate", pair_gate(zz, wg, bg), _pair_ref(zz, p12, p21))
    got_m, got_pool = pair_gate(zz, wg, bg, reduce_out=True, with_pool=True)
    want_m, want_pool = _pair_ref(zz, p12, p21, reduce_out=True, with_pool=True)
    _assert_close("pair reduce", got_m, want_m)
    _assert_close("pair pool", got_pool, want_pool)
    _assert_close("pair reduce+res",
                  pair_gate(zz, wg, bg, res=res64, reduce_out=True),
                  _pair_ref(zz, p12, p21, res=res64, reduce_out=True))

    # --- full EDSR forward -----------------------------------------------------
    upscale = 2
    x = jax.random.normal(k_x, (2, 3, 16, 16), jnp.float32)   # NCHW like PyTorch
    params, up_factors = init_edsr_params(k_p, upscale_factor=upscale)

    out = edsr_forward(x, params, up_factors)
    out = jax.block_until_ready(out)
    assert out.shape == (2, 3, 16 * upscale, 16 * upscale), out.shape
    assert bool(jnp.all(jnp.isfinite(out)))
    print("KERNEL_OK")
</pallas_src>

<mosaic_0001>
module attributes {stable_mosaic.version = 11 : i64} {
  func.func @_conv3x3_kernel(%arg0: i32, %arg1: i32, %arg2: memref<1x8x16x3xbf16, #tpu.memory_space<vmem>>, %arg3: memref<1x1x16x3xbf16, #tpu.memory_space<vmem>>, %arg4: memref<1x1x16x3xbf16, #tpu.memory_space<vmem>>, %arg5: memref<3x9x64xbf16, #tpu.memory_space<vmem>>, %arg6: memref<1x64xf32, #tpu.memory_space<vmem>>, %arg7: memref<1x8x16x64xbf16, #tpu.memory_space<vmem>>, %arg8: memref<10x18x3xbf16, #tpu.memory_space<vmem>>) attributes {dimension_semantics = [#tpu.dimension_semantics<parallel>, #tpu.dimension_semantics<parallel>], iteration_bounds = array<i64: 2, 2>, scalar_prefetch = 0 : i64, scratch_operands = 1 : i64, tpu.core_type = #tpu.core_type<tc>, window_params = [{transform_indices = @transform_0, window_bounds = array<i64: 1, 8, 16, 3>}, {transform_indices = @transform_1, window_bounds = array<i64: 1, 1, 16, 3>}, {transform_indices = @transform_2, window_bounds = array<i64: 1, 1, 16, 3>}, {pipeline_mode = #tpu.pipeline_mode<synchronous>, transform_indices = @transform_3, window_bounds = array<i64: 3, 9, 64>}, {pipeline_mode = #tpu.pipeline_mode<synchronous>, transform_indices = @transform_4, window_bounds = array<i64: 1, 64>}, {transform_indices = @transform_5, window_bounds = array<i64: 1, 8, 16, 64>}]} {
    %cst = arith.constant 0.000000e+00 : bf16
    %0 = vector.broadcast %cst : bf16 to vector<10x1x3xbf16>
    %c0 = arith.constant 0 : index
    %c0_0 = arith.constant 0 : index
    %c0_1 = arith.constant 0 : index
    %1 = vector.load %arg8[%c0, %c0_0, %c0_1] : memref<10x18x3xbf16, #tpu.memory_space<vmem>>, vector<10x1x3xbf16>
    tpu.vector_store %arg8[%c0, %c0_0, %c0_1], %0 {strides = array<i32>} : memref<10x18x3xbf16, #tpu.memory_space<vmem>>, vector<10x1x3xbf16>,
    %c0_2 = arith.constant 0 : index
    %c17 = arith.constant 17 : index
    %c0_3 = arith.constant 0 : index
    %2 = vector.load %arg8[%c0_2, %c17, %c0_3] : memref<10x18x3xbf16, #tpu.memory_space<vmem>>, vector<10x1x3xbf16>
    tpu.vector_store %arg8[%c0_2, %c17, %c0_3], %0 {strides = array<i32>} : memref<10x18x3xbf16, #tpu.memory_space<vmem>>, vector<10x1x3xbf16>,
    %c0_4 = arith.constant 0 : index
    %c0_5 = arith.constant 0 : index
    %c0_6 = arith.constant 0 : index
    %c0_7 = arith.constant 0 : index
    %3 = vector.load %arg2[%c0_4, %c0_5, %c0_6, %c0_7] : memref<1x8x16x3xbf16, #tpu.memory_space<vmem>>, vector<1x8x16x3xbf16>
    %4 = vector.shape_cast %3 : vector<1x8x16x3xbf16> to vector<8x16x3xbf16>
    %c1 = arith.constant 1 : index
    %c1_8 = arith.constant 1 : index
    %c0_9 = arith.constant 0 : index
    %5 = vector.load %arg8[%c1, %c1_8, %c0_9] : memref<10x18x3xbf16, #tpu.memory_space<vmem>>, vector<8x16x3xbf16>
    tpu.vector_store %arg8[%c1, %c1_8, %c0_9], %4 {strides = array<i32>} : memref<10x18x3xbf16, #tpu.memory_space<vmem>>, vector<8x16x3xbf16>,
    %c0_i32 = arith.constant 0 : i32
    %6 = arith.cmpi sgt, %arg1, %c0_i32 : i32
    %7 = arith.extui %6 : i1 to i32
    %8 = arith.sitofp %7 : i32 to f32
    %9 = arith.truncf %8 : f32 to bf16
    %c1_i32 = arith.constant 1 : i32
    %10 = arith.cmpi slt, %arg1, %c1_i32 : i32
    %11 = arith.extui %10 : i1 to i32
    %12 = arith.sitofp %11 : i32 to f32
    %13 = arith.truncf %12 : f32 to bf16
    %c0_10 = arith.constant 0 : index
    %c0_11 = arith.constant 0 : index
    %c0_12 = arith.constant 0 : index
    %c0_13 = arith.constant 0 : index
    %14 = vector.load %arg3[%c0_10, %c0_11, %c0_12, %c0_13] : memref<1x1x16x3xbf16, #tpu.memory_space<vmem>>, vector<1x1x16x3xbf16>
    %15 = vector.shape_cast %14 : vector<1x1x16x3xbf16> to vector<16x3xbf16>
    %16 = vector.broadcast %9 : bf16 to vector<16x3xbf16>
    %17 = arith.mulf %15, %16 : vector<16x3xbf16>
    %c0_14 = arith.constant 0 : index
    %c1_15 = arith.constant 1 : index
    %c0_16 = arith.constant 0 : index
    %18 = vector.load %arg8[%c0_14, %c1_15, %c0_16] : memref<10x18x3xbf16, #tpu.memory_space<vmem>>, vector<1x16x3xbf16>
    %19 = vector.shape_cast %18 : vector<1x16x3xbf16> to vector<16x3xbf16>
    %20 = vector.shape_cast %17 : vector<16x3xbf16> to vector<1x16x3xbf16>
    tpu.vector_store %arg8[%c0_14, %c1_15, %c0_16], %20 {strides = array<i32>} : memref<10x18x3xbf16, #tpu.memory_space<vmem>>, vector<1x16x3xbf16>,
    %c0_17 = arith.constant 0 : index
    %c0_18 = arith.constant 0 : index
    %c0_19 = arith.constant 0 : index
    %c0_20 = arith.constant 0 : index
    %21 = vector.load %arg4[%c0_17, %c0_18, %c0_19, %c0_20] : memref<1x1x16x3xbf16, #tpu.memory_space<vmem>>, vector<1x1x16x3xbf16>
    %22 = vector.shape_cast %21 : vector<1x1x16x3xbf16> to vector<16x3xbf16>
    %23 = vector.broadcast %13 : bf16 to vector<16x3xbf16>
    %24 = arith.mulf %22, %23 : vector<16x3xbf16>
    %c9 = arith.constant 9 : index
    %c1_21 = arith.constant 1 : index
    %c0_22 = arith.constant 0 : index
    %25 = vector.load %arg8[%c9, %c1_21, %c0_22] : memref<10x18x3xbf16, #tpu.memory_space<vmem>>, vector<1x16x3xbf16>
    %26 = vector.shape_cast %25 : vector<1x16x3xbf16> to vector<16x3xbf16>
    %27 = vector.shape_cast %24 : vector<16x3xbf16> to vector<1x16x3xbf16>
    tpu.vector_store %arg8[%c9, %c1_21, %c0_22], %27 {strides = array<i32>} : memref<10x18x3xbf16, #tpu.memory_space<vmem>>, vector<1x16x3xbf16>,
    %cst_23 = arith.constant 0.000000e+00 : f32
    %28 = vector.broadcast %cst_23 : f32 to vector<128x64xf32>
    %c0_24 = arith.constant 0 : index
    %c0_25 = arith.constant 0 : index
    %c0_26 = arith.constant 0 : index
    %29 = vector.load %arg8[%c0_24, %c0_25, %c0_26] : memref<10x18x3xbf16, #tpu.memory_space<vmem>>, vector<8x16x3xbf16>
    %c0_27 = arith.constant 0 : index
    %c1_28 = arith.constant 1 : index
    %c0_29 = arith.constant 0 : index
    %30 = vector.load %arg8[%c0_27, %c1_28, %c0_29] : memref<10x18x3xbf16, #tpu.memory_space<vmem>>, vector<8x16x3xbf16>
    %c0_30 = arith.constant 0 : index
    %c2 = arith.constant 2 : index
    %c0_31 = arith.constant 0 : index
    %31 = vector.load %arg8[%c0_30, %c2, %c0_31] : memref<10x18x3xbf16, #tpu.memory_space<vmem>>, vector<8x16x3xbf16>
    %32 = tpu.concatenate %29, %30, %31 in 2 : vector<8x16x3xbf16>, vector<8x16x3xbf16>, vector<8x16x3xbf16> -> vector<8x16x9xbf16>
    %33 = vector.shape_cast %32 : vector<8x16x9xbf16> to vector<128x9xbf16>
    %c0_32 = arith.constant 0 : index
    %c0_33 = arith.constant 0 : index
    %c0_34 = arith.constant 0 : index
    %34 = vector.load %arg5[%c0_32, %c0_33, %c0_34] : memref<3x9x64xbf16, #tpu.memory_space<vmem>>, vector<1x9x64xbf16>
    %35 = vector.shape_cast %34 : vector<1x9x64xbf16> to vector<9x64xbf16>
    %cst_35 = arith.constant dense<0.000000e+00> : vector<128x64xf32>
    %36 = tpu.matmul %33, %35, %cst_35 {dimension_numbers = #tpu.dot_dimension_numbers<[1], [0], [0], [1], [0, 0, 1, 1], [], []>} : vector<128x9xbf16>, vector<9x64xbf16>, vector<128x64xf32> -> vector<128x64xf32>
    %37 = arith.addf %28, %36 : vector<128x64xf32>
    %c1_36 = arith.constant 1 : index
    %c0_37 = arith.constant 0 : index
    %c0_38 = arith.constant 0 : index
    %38 = vector.load %arg8[%c1_36, %c0_37, %c0_38] : memref<10x18x3xbf16, #tpu.memory_space<vmem>>, vector<8x16x3xbf16>
    %c1_39 = arith.constant 1 : index
    %c1_40 = arith.constant 1 : index
    %c0_41 = arith.constant 0 : index
    %39 = vector.load %arg8[%c1_39, %c1_40, %c0_41] : memref<10x18x3xbf16, #tpu.memory_space<vmem>>, vector<8x16x3xbf16>
    %c1_42 = arith.constant 1 : index
    %c2_43 = arith.constant 2 : index
    %c0_44 = arith.constant 0 : index
    %40 = vector.load %arg8[%c1_42, %c2_43, %c0_44] : memref<10x18x3xbf16, #tpu.memory_space<vmem>>, vector<8x16x3xbf16>
    %41 = tpu.concatenate %38, %39, %40 in 2 : vector<8x16x3xbf16>, vector<8x16x3xbf16>, vector<8x16x3xbf16> -> vector<8x16x9xbf16>
    %42 = vector.shape_cast %41 : vector<8x16x9xbf16> to vector<128x9xbf16>
    %c1_45 = arith.constant 1 : index
    %c0_46 = arith.constant 0 : index
    %c0_47 = arith.constant 0 : index
    %43 = vector.load %arg5[%c1_45, %c0_46, %c0_47] : memref<3x9x64xbf16, #tpu.memory_space<vmem>>, vector<1x9x64xbf16>
    %44 = vector.shape_cast %43 : vector<1x9x64xbf16> to vector<9x64xbf16>
    %cst_48 = arith.constant dense<0.000000e+00> : vector<128x64xf32>
    %45 = tpu.matmul %42, %44, %cst_48 {dimension_numbers = #tpu.dot_dimension_numbers<[1], [0], [0], [1], [0, 0, 1, 1], [], []>} : vector<128x9xbf16>, vector<9x64xbf16>, vector<128x64xf32> -> vector<128x64xf32>
    %46 = arith.addf %37, %45 : vector<128x64xf32>
    %c2_49 = arith.constant 2 : index
    %c0_50 = arith.constant 0 : index
    %c0_51 = arith.constant 0 : index
    %47 = vector.load %arg8[%c2_49, %c0_50, %c0_51] : memref<10x18x3xbf16, #tpu.memory_space<vmem>>, vector<8x16x3xbf16>
    %c2_52 = arith.constant 2 : index
    %c1_53 = arith.constant 1 : index
    %c0_54 = arith.constant 0 : index
    %48 = vector.load %arg8[%c2_52, %c1_53, %c0_54] : memref<10x18x3xbf16, #tpu.memory_space<vmem>>, vector<8x16x3xbf16>
    %c2_55 = arith.constant 2 : index
    %c2_56 = arith.constant 2 : index
    %c0_57 = arith.constant 0 : index
    %49 = vector.load %arg8[%c2_55, %c2_56, %c0_57] : memref<10x18x3xbf16, #tpu.memory_space<vmem>>, vector<8x16x3xbf16>
    %50 = tpu.concatenate %47, %48, %49 in 2 : vector<8x16x3xbf16>, vector<8x16x3xbf16>, vector<8x16x3xbf16> -> vector<8x16x9xbf16>
    %51 = vector.shape_cast %50 : vector<8x16x9xbf16> to vector<128x9xbf16>
    %c2_58 = arith.constant 2 : index
    %c0_59 = arith.constant 0 : index
    %c0_60 = arith.constant 0 : index
    %52 = vector.load %arg5[%c2_58, %c0_59, %c0_60] : memref<3x9x64xbf16, #tpu.memory_space<vmem>>, vector<1x9x64xbf16>
    %53 = vector.shape_cast %52 : vector<1x9x64xbf16> to vector<9x64xbf16>
    %cst_61 = arith.constant dense<0.000000e+00> : vector<128x64xf32>
    %54 = tpu.matmul %51, %53, %cst_61 {dimension_numbers = #tpu.dot_dimension_numbers<[1], [0], [0], [1], [0, 0, 1, 1], [], []>} : vector<128x9xbf16>, vector<9x64xbf16>, vector<128x64xf32> -> vector<128x64xf32>
    %55 = arith.addf %46, %54 : vector<128x64xf32>
    %c0_62 = arith.constant 0 : index
    %c0_63 = arith.constant 0 : index
    %56 = vector.load %arg6[%c0_62, %c0_63] : memref<1x64xf32, #tpu.memory_space<vmem>>, vector<1x64xf32>
    %57 = vector.broadcast %56 : vector<1x64xf32> to vector<128x64xf32>
    %58 = arith.addf %55, %57 : vector<128x64xf32>
    %59 = vector.shape_cast %58 : vector<128x64xf32> to vector<8x16x64xf32>
    %60 = arith.truncf %59 : vector<8x16x64xf32> to vector<8x16x64xbf16>
    %c0_64 = arith.constant 0 : index
    %c0_65 = arith.constant 0 : index
    %c0_66 = arith.constant 0 : index
    %c0_67 = arith.constant 0 : index
    %61 = vector.load %arg7[%c0_64, %c0_65, %c0_66, %c0_67] : memref<1x8x16x64xbf16, #tpu.memory_space<vmem>>, vector<1x8x16x64xbf16>
    %62 = vector.shape_cast %61 : vector<1x8x16x64xbf16> to vector<8x16x64xbf16>
    %63 = vector.shape_cast %60 : vector<8x16x64xbf16> to vector<1x8x16x64xbf16>
    tpu.vector_store %arg7[%c0_64, %c0_65, %c0_66, %c0_67], %63 {strides = array<i32>} : memref<1x8x16x64xbf16, #tpu.memory_space<vmem>>, vector<1x8x16x64xbf16>,
    return
  }
  func.func @transform_0(%arg0: i32, %arg1: i32) -> (i32, i32, i32, i32) {
    %c0_i32 = arith.constant 0 : i32
    %c0_i32_0 = arith.constant 0 : i32
    %c0_i32_1 = arith.constant 0 : i32
    return %arg0, %arg1, %c0_i32, %c0_i32_0 : i32, i32, i32, i32
  }
  func.func @transform_1(%arg0: i32, %arg1: i32) -> (i32, i32, i32, i32) {
    %c8_i32 = arith.constant 8 : i32
    %0 = arith.muli %arg1, %c8_i32 : i32
    %c1_i32 = arith.constant 1 : i32
    %1 = arith.subi %0, %c1_i32 : i32
    %c0_i32 = arith.constant 0 : i32
    %2 = arith.maxsi %1, %c0_i32 : i32
    %c0_i32_0 = arith.constant 0 : i32
    %c0_i32_1 = arith.constant 0 : i32
    %c0_i32_2 = arith.constant 0 : i32
    return %arg0, %2, %c0_i32_0, %c0_i32_1 : i32, i32, i32, i32
  }
  func.func @transform_2(%arg0: i32, %arg1: i32) -> (i32, i32, i32, i32) {
    %c8_i32 = arith.constant 8 : i32
    %0 = arith.muli %arg1, %c8_i32 : i32
    %c8_i32_0 = arith.constant 8 : i32
    %1 = arith.addi %0, %c8_i32_0 : i32
    %c15_i32 = arith.constant 15 : i32
    %2 = arith.minsi %1, %c15_i32 : i32
    %c0_i32 = arith.constant 0 : i32
    %c0_i32_1 = arith.constant 0 : i32
    %c0_i32_2 = arith.constant 0 : i32
    return %arg0, %2, %c0_i32, %c0_i32_1 : i32, i32, i32, i32
  }
  func.func @transform_3(%arg0: i32, %arg1: i32) -> (i32, i32, i32) {
    %c0_i32 = arith.constant 0 : i32
    %c0_i32_0 = arith.constant 0 : i32
    %c0_i32_1 = arith.constant 0 : i32
    %c0_i32_2 = arith.constant 0 : i32
    return %c0_i32, %c0_i32_0, %c0_i32_1 : i32, i32, i32
  }
  func.func @transform_4(%arg0: i32, %arg1: i32) -> (i32, i32) {
    %c0_i32 = arith.constant 0 : i32
    %c0_i32_0 = arith.constant 0 : i32
    %c0_i32_1 = arith.constant 0 : i32
    return %c0_i32, %c0_i32_0 : i32, i32
  }
  func.func @transform_5(%arg0: i32, %arg1: i32) -> (i32, i32, i32, i32) {
    %c0_i32 = arith.constant 0 : i32
    %c0_i32_0 = arith.constant 0 : i32
    %c0_i32_1 = arith.constant 0 : i32
    return %arg0, %arg1, %c0_i32, %c0_i32_0 : i32, i32, i32, i32
  }
}

</mosaic_0001>

<bundles_post_ra>
// kernel: conv3x3.1
= control target key start
LH: loop header
LB: loop body
LE: loop exit
PB: predicated region body
PF: predicated region fallthrough
CT: control target
= control target key end

     0   :  { %10 = vsyncpa [#allocation4], 0  ;;  %s3446_s0 = inlined_call_operand.vmem [shape: bf16[2,16,16,3], index: 0, kind: input, shape index: {}, may-alias: {0,1,2}]   ;;  %s3447_s1 = inlined_call_operand.vmem [shape: bf16[2,16,16,3], index: 1, kind: input, shape index: {}, may-alias: {0,1,2}]   ;;  %s3448_s2 = inlined_call_operand.vmem [shape: bf16[2,16,16,3], index: 2, kind: input, shape index: {}, may-alias: {0,1,2}]   ;;  %s3449_s3 = inlined_call_operand.vmem [shape: bf16[3,9,64], index: 3, kind: input, shape index: {}]   ;;  %s3450_s4 = inlined_call_operand.vmem [shape: f32[1,64], index: 4, kind: input, shape index: {}]   ;;  %s3451_s5 = inlined_call_operand.hbm [shape: bf16[2,16,16,64], index: 5, kind: output, shape index: {}]  }
   0x1   :  { %12 = vsyncpa [#allocation4 + $0x1], 0  ;;  %s2594_s18 = smov 0   ;;  %s2596_s19 = smov 0  }
   0x2   :  { %s2598_s20 = smov 0   ;;  %s2600_s21 = smov 0  }
   0x3   :  { %s2602_s22 = smov 0   ;;  %s2604_s23 = smov 0  }
   0x4   :  { %s2606_s24 = smov 0   ;;  %s2608_s25 = smov 0  }
   0x5 LB: > { %s2156_s26 = sadd.s32 4294967295, %s2557_s25   ;;  %s2157_s27 = sadd.s32 4294967294, %s2557_s25   ;;  %s2557_s25 = sphi %s2608_s25, %s18_s25   ;;  %s2553_s24 = sphi %s2606_s24, %s3470_s24   ;;  %s2549_s23 = sphi %s2604_s23, %s3469_s23   ;;  %s2545_s22 = sphi %s2602_s22, %s3468_s22   ;;  %s2541_s21 = sphi %s2600_s21, %s3467_s21   ;;  %s2537_s20 = sphi %s2598_s20, %s3466_s20   ;;  %s2533_s19 = sphi %s2596_s19, %s3465_s19   ;;  %s2529_s18 = sphi %s2594_s18, %s3464_s18  }
   0x6   : > { %s27_s28 = sadd.s32 1, %s2549_s23  ;;  %s30_s29 = sadd.s32 1, %s2553_s24 }
   0x7   : > { %p28_p0 = scmp.ge.s32.totalorder %s27_s28, 2  ;;  %p191_p1 = scmp.ne.s32.totalorder %s2537_s20, %s2533_s19 }
   0x8   : > { %p192_p2 = scmp.eq.s32.totalorder %s2156_s26, 3  ;;  %p197_p5 = scmp.ne.s32.totalorder %s2533_s19, %s2529_s18 }
   0x9   : > { %s3472_s28 = smov (%p28_p0, %s27_s28), 0  ;;  %s3474_s29 = smov (!%p28_p0, %s30_s29), %s2553_s24 }
   0xa   : > { %s177_s30 = ssub.s32 %s2549_s23, %s3472_s28  ;;  %p2645_p3 = por %p192_p2, %p191_p1 }
   0xb   : > { %p32_p4 = scmp.ge.s32.totalorder %s3474_s29, 2  ;;  %p198_p6 = scmp.eq.s32.totalorder %s2157_s27, 3 }
   0xc   : > { %p2166_p7 = scmp.ge.s32.totalorder %s2557_s25, 1  ;;  %p276_p9 = scmp.lt.s32.totalorder %s2557_s25, 5 }
   0xd   : > { %s3476_s29 = smov (%p32_p4, %s3474_s29), 0  ;;  %p2654_p8 = por %p198_p6, %p197_p5 }
   0xe   : > { %s176_s8 = ssub.s32 %s2553_s24, %s3476_s29  ;;  %s181_s9 = sadd.s32 1, %s2537_s20 }
   0xf   : > { %s178_s10 = sor.u32 %s177_s30, %s176_s8  ;;  %p277_p10 = pnand %p2166_p7, %p276_p9 }
  0x10   : > { %p179_p11 = scmp.eq.s32.totalorder %s178_s10, 0  ;;  %s2666_s12 = sshll.u32 (!%p277_p10), %s2541_s21, 3 }
  0x11   : > { %280 = sbr.rel (%p277_p10) target bundleno = 451 (0x1c3), region = 40  ;;  %p336_p12 = scmp.lt.s32.totalorder (!%p277_p10), %s2545_s22, 1 }
  0x12   : > { %s2663_s11 = scalar_select %p179_p11, %s2537_s20, %s181_s9  }
  0x13   : > { %p338_p13 = scmp.lt.s32.totalorder (!%p277_p10), %s2666_s12, 15  ;;  %s2703_s9 = sadd.s32 (!%p277_p10), 4294967295, %s2666_s12 }
  0x14   : > { %p348_p0 = scmp.gt.s32.totalorder (!%p277_p10), %s2703_s9, 0  ;;  %p2174_p1 = scmp.lt.s32.totalorder (!%p277_p10), %s2703_s9, 15 }
  0x15   : > { %p685_p4 = scmp.gt.s32.totalorder (!%p277_p10), %s2541_s21, 0  ;;  %p698_p6 = scmp.lt.s32.totalorder (!%p277_p10), %s2541_s21, 1 }
  0x16   : > { %vm382_vm0 = vcmask 16384   ;;  %vm383_vm1 = vsmask.f32 256  ;;  %v406_v1 = vld [vmem:[#allocation2 + $0x54] sm:$0x1]  ;;  %s337_s13 = scalar_select %p336_p12, %s2545_s22, 1 }
  0x17   : > { %vm2671_vm2 = vmand %vm382_vm0, %vm383_vm1  ;;  %vm415_vm3 = vsmask.f32 7938  ;;  %v438_v4 = vld [vmem:[#allocation2 + $0x5c] sm:$0x1]  ;;  %s339_s14 = scalar_select %p338_p13, %s2666_s12, 15  ;;  %vm626_vm5 = vcmask 19456  }
  0x18   : > { %v407_v2 = vsel %vm2671_vm2, 0, %v406_v1  ;;  %vm2679_vm4 = vmand %vm382_vm0, %vm415_vm3  ;;  %v391_v6 = vld [vmem:[#allocation2 + $0x18] sm:$0x1]  ;;  %s2686_s15 = sshll.u32 %s337_s13, 5  ;;  %v423_v8 = vld [vmem:[#allocation2 + $0x20] sm:$0x1] }
  0x19   : > { %408 = vst [vmem:[#allocation2 + $0x54] sm:$0x1] %v407_v2  ;;  %v439_v5 = vsel %vm2679_vm4, 0, %v438_v4  ;;  %v392_v7 = vsel %vm2671_vm2, 0, %v391_v6  ;;  %s2169_s16 = sshll.u32 %s339_s14, 1  ;;  %v424_v9 = vsel %vm2679_vm4, 0, %v423_v8  ;;  %vm2717_vm8 = vmand %vm626_vm5, %vm415_vm3 }
  0x1a   : > { %440 = vst [vmem:[#allocation2 + $0x5c] sm:$0x1] %v439_v5  ;;  %s342_s17 = sadd.s32 %s2686_s15, %s2169_s16  ;;  %v394_v10 = vld [vmem:[#allocation2 + $0x24] sm:$0x1]  ;;  %v426_v11 = vld [vmem:[#allocation2 + $0x2c] sm:$0x1] }
  0x1b   : > { %393 = vst [vmem:[#allocation2 + $0x18] sm:$0x1] %v392_v7  ;;  %s2171_s26 = sshll.u32 %s342_s17, 2  ;;  %v395_v12 = vsel %vm2671_vm2, 0, %v394_v10  ;;  %vm463_vm6 = vsmask.f32 4368 }
  0x1c   : > { %425 = vst [vmem:[#allocation2 + $0x20] sm:$0x1] %v424_v9  ;;  %s2698_s8 = scalar_lea.vmem %s3446_s0, %s2171_s26  ;;  %v427_v13 = vsel %vm2679_vm4, 0, %v426_v11  ;;  %v388_v21 = vld [vmem:[#allocation2 + $0xc] sm:$0x1]  ;;  %vm2711_vm7 = vmor %vm383_vm1, %vm463_vm6  ;;  %vm1025_vm9 = vcmask 1046528  }
  0x1d   : > { %396 = vst [vmem:[#allocation2 + $0x24] sm:$0x1] %v395_v12  ;;  %v459_v14 = vld [vmem:[%s2698_s8 + $0x30] sm:$0xf]  ;;  %v460_v15 = vld [vmem:[%s2698_s8 + $0x34] sm:$0xf] }
  0x1e   : > { %v449_v16 = vld [vmem:[%s2698_s8 + $0x8] sm:$0xf]  ;;  %v568_v17 = vshrl.u32 %v459_v14, 16  ;;  %v571_v18 = vshll.u32 %v459_v14, 16  ;;  %v576_v19 = vshrl.u32 %v460_v15, 16  ;;  %v579_v20 = vshll.u32 %v460_v15, 16 }
  0x1f   : > { %v450_v23 = vld [vmem:[%s2698_s8 + $0xc] sm:$0xf]  ;;  %v483_v24 = vshrl.u32 %v449_v16, 16  ;;  %v486_v25 = vshll.u32 %v449_v16, 16  ;;  %428 = vst [vmem:[#allocation2 + $0x2c] sm:$0x1] %v427_v13 }
  0x20   : > { %v671_v22 = vld [vmem:[#allocation2 + $0x54] sm:$0xf]  ;;  %v570_v27 = vrot.slane %v568_v17, 7  ;;  %v578_v28 = vrot.slane %v576_v19, 7  ;;  %v491_v30 = vshrl.u32 %v450_v23, 16  ;;  %v494_v31 = vshll.u32 %v450_v23, 16 }
  0x21   : > { %v675_v29 = vld [vmem:[#allocation2 + $0x5c] sm:$0x1]  ;;  %v485_v33 = vrot.slane %v483_v24, 7  ;;  %v389_v35 = vsel %vm2671_vm2, 0, %v388_v21  ;;  %v420_v36 = vld [vmem:[#allocation2 + $0x14] sm:$0x1] }
  0x22   : > { %v636_v34 = vld [vmem:[#allocation2 + $0x18] sm:$0xf]  ;;  %v573_v37 = vor.u32 %v571_v18, %v570_v27  ;;  %v574_v38 = vrot.slane %v570_v27, 4  ;;  %v581_v39 = vor.u32 %v579_v20, %v578_v28  ;;  %v583_v40 = vrot.slane %v578_v28, 4  ;;  %v451_v42 = vld [vmem:[%s2698_s8 + $0x10] sm:$0xf] }
  0x23   : > { %v640_v41 = vld [vmem:[#allocation2 + $0x20] sm:$0x1]  ;;  %v488_v43 = vor.u32 %v486_v25, %v485_v33  ;;  %v489_v44 = vrot.slane %v485_v33, 4  ;;  %v493_v45 = vrot.slane %v491_v30, 7  ;;  %v452_v46 = vld [vmem:[%s2698_s8 + $0x14] sm:$0xf] }
  0x24   : > { %v500_v47 = vshrl.u32 %v451_v42, 16  ;;  %v582_v48 = vsel %vm2711_vm7, %v574_v38, %v581_v39  ;;  %v672_v49 = vsel %vm2717_vm8, %v573_v37, %v671_v22  ;;  %v676_v50 = vsel %vm2671_vm2, %v583_v40, %v675_v29  ;;  %v643_v52 = vld [vmem:[#allocation2 + $0x24] sm:$0xf]  ;;  %390 = vst [vmem:[#allocation2 + $0xc] sm:$0x1] %v389_v35  ;;  %s2749_s10 = scalar_select %p348_p0, %s2703_s9, 0 }
  0x25   : > { %v503_v51 = vshll.u32 %v451_v42, 16  ;;  %673 = vst [vmem:[#allocation2 + $0x54] sm:$0xf] %v672_v49  ;;  %v496_v53 = vor.u32 %v494_v31, %v493_v45  ;;  %v498_v54 = vrot.slane %v493_v45, 4  ;;  %v637_v55 = vsel %vm2717_vm8, %v488_v43, %v636_v34  ;;  %v447_v57 = vld [vmem:[%s2698_s8] sm:$0xf] }
  0x26   : > { %v502_v56 = vrot.slane %v500_v47, 7  ;;  %674 = vst.msk [vmem:[#allocation2 + $0x58] sm:$0xf] %vm626_vm5, %v582_v48  ;;  %v508_v58 = vshrl.u32 %v452_v46, 16  ;;  %v511_v59 = vshll.u32 %v452_v46, 16  ;;  %v421_v60 = vsel %vm2679_vm4, 0, %v420_v36 }
  0x27   : > { %v466_v61 = vshrl.u32 %v447_v57, 16  ;;  %677 = vst [vmem:[#allocation2 + $0x5c] sm:$0x1] %v676_v50  ;;  %v497_v62 = vsel %vm2711_vm7, %v489_v44, %v496_v53  ;;  %v641_v63 = vsel %vm2671_vm2, %v498_v54, %v640_v41  ;;  %v448_v4 = vld [vmem:[%s2698_s8 + $0x4] sm:$0xf]  ;;  %v469_v9 = vshll.u32 %v447_v57, 16 }
  0x28   : > { %v505_v1 = vor.u32 %v503_v51, %v502_v56  ;;  %v506_v2 = vrot.slane %v502_v56, 4  ;;  %638 = vst [vmem:[#allocation2 + $0x18] sm:$0xf] %v637_v55  ;;  %v510_v5 = vrot.slane %v508_v58, 7  ;;  %v647_v6 = vld [vmem:[#allocation2 + $0x2c] sm:$0x1] }
  0x29   : > { %v468_v7 = vrot.slane %v466_v61, 7  ;;  %639 = vst.msk [vmem:[#allocation2 + $0x1c] sm:$0xf] %vm626_vm5, %v497_v62  ;;  %v474_v10 = vshrl.u32 %v448_v4, 16  ;;  %v477_v11 = vshll.u32 %v448_v4, 16  ;;  %s3478_s10 = smov (!%p2174_p1, %s2749_s10), 15 }
  0x2a   : > { %v644_v8 = vsel %vm2717_vm8, %v505_v1, %v643_v52  ;;  %642 = vst [vmem:[#allocation2 + $0x20] sm:$0x1] %v641_v63  ;;  %v513_v12 = vor.u32 %v511_v59, %v510_v5  ;;  %v515_v13 = vrot.slane %v510_v5, 4  ;;  %v409_v14 = vld [vmem:[#allocation2 + $0x60] sm:$0x1]  ;;  %s364_s13 = sadd.s32 8, %s2666_s12 }
  0x2b   : > { %645 = vst [vmem:[#allocation2 + $0x24] sm:$0xf] %v644_v8  ;;  %v471_v15 = vor.u32 %v469_v9, %v468_v7  ;;  %v472_v16 = vrot.slane %v468_v7, 4  ;;  %v2751_v17 = vrot.slane %v474_v10, 7  ;;  %v628_v18 = vld [vmem:[#allocation2 + $0xc] sm:$0xf] }
  0x2c   : > { %v2513_v19 = vld [vmem:[#allocation2 + $0x54] sm:$0xe]  ;;  %v514_v20 = vsel %vm2711_vm7, %v506_v2, %v513_v12  ;;  %v648_v21 = vsel %vm2671_vm2, %v515_v13, %v647_v6  ;;  %422 = vst [vmem:[#allocation2 + $0x14] sm:$0x1] %v421_v60  ;;  %v410_v27 = vsel %vm2671_vm2, 0, %v409_v14  ;;  %s2559_s14 = smov 6  }
  0x2d   : > { %v2758_v22 = vld [vmem:[#allocation2 + $0x54] sm:$0xff]   ;;  %646 = vst.msk [vmem:[#allocation2 + $0x28] sm:$0xf] %vm626_vm5, %v514_v20  ;;  %v479_v24 = vor.u32 %v477_v11, %v2751_v17  ;;  %v629_v25 = vsel %vm2717_vm8, %v471_v15, %v628_v18  ;;  %v441_v28 = vld [vmem:[#allocation2 + $0x68] sm:$0x1]  ;;  %v481_v40 = vrot.slane %v2751_v17, 4 }
  0x2e   : > { %v2512_v23 = vld [vmem:[#allocation2 + $0x54] sm:$0xf0]  ;;  %v1124_v29 = vld [vmem:[#allocation2 + $0x5c] sm:$0x1]  ;;  %649 = vst [vmem:[#allocation2 + $0x2c] sm:$0x1] %v648_v21 }
  0x2f   : > { %v2767_v30 = vld [vmem:[%s2698_s8 + $0x38] sm:$0xf]  ;;  %v1188_v31 = vunpack.c.l.b16 %v1124_v29  ;;  %v480_v35 = vsel %vm2711_vm7, %v472_v16, %v479_v24  ;;  %630 = vst [vmem:[#allocation2 + $0xc] sm:$0xf] %v629_v25  ;;  %v2514_v36 = vor.u32 %v2513_v19, %v2512_v23  ;;  %v442_v45 = vsel %vm2679_vm4, 0, %v441_v28  ;;  %p2793_p2 = scmp.lt.s32.totalorder %s364_s13, 15 }
  0x30   : > { %v2318_v33 = vld [vmem:[#allocation2 + $0x18] sm:$0xe]  ;;  %v2317_v37 = vld [vmem:[#allocation2 + $0x18] sm:$0xf0]  ;;  %632 = vst.msk [vmem:[#allocation2 + $0x10] sm:$0xf] %vm626_vm5, %v480_v35 }
  0x31   : > { %v2333_v34 = vld [vmem:[#allocation2 + $0x18] sm:$0xe]  ;;  %v2332_v38 = vld [vmem:[#allocation2 + $0x18] sm:$0xf0]  ;;  %v2772_v41 = vpack.c.b16 %v1188_v31, %v1188_v31  ;;  %v1119_v42 = vld [vmem:[#allocation2 + $0x20] sm:$0x1]  ;;  %v2319_v43 = vor.u32 %v2318_v33, %v2317_v37 }
  0x32   : > { %v2283_v39 = vld [vmem:[#allocation2 + $0x18] sm:$0xff]   ;;  %v1577_v44 = vld [vmem:[#allocation2 + $0x20] sm:$0x1]  ;;  %v1352_v46 = vrot.slane %v2514_v36, 1  ;;  %v1183_v47 = vunpack.c.l.b16 %v1119_v42  ;;  %v2516_v50 = vld [vmem:[#allocation2 + $0x24] sm:$0xe]  ;;  %v2334_v52 = vor.u32 %v2333_v34, %v2332_v38 }
  0x33   : > { %v1641_v48 = vunpack.c.l.b16 %v1577_v44  ;;  %v1660_v49 = vshll.u32 %v2283_v39, 16  ;;  %v1353_v51 = vrot.slane %v2772_v41, 1  ;;  %vm888_vm10 = vsmask.f32 7424  ;;  %411 = vst [vmem:[#allocation2 + $0x60] sm:$0x1] %v410_v27 }
  0x34   : > { %v585_v53 = vshrl.u32 %v2767_v30, 16  ;;  %v2784_v54 = vpack.c.b16 %v1183_v47, %v1183_v47  ;;  %v1337_v55 = vrot.slane %v2319_v43, 1  ;;  %v1658_v57 = vshrl.u32 %v2283_v39, 16  ;;  %v2786_v58 = vld [vmem:[#allocation2 + $0x24] sm:$0xff]   ;;  %443 = vst [vmem:[#allocation2 + $0x68] sm:$0x1] %v442_v45 }
  0x35   : > { %v1649_v56 = vpack.c.b16 %v1641_v48, %v1641_v48  ;;  %v2515_v59 = vld [vmem:[#allocation2 + $0x24] sm:$0xf0]  ;;  %v1354_v60 = vsel %vm1025_vm9, %v1352_v46, %v1353_v51  ;;  %v1578_v61 = vld [vmem:[#allocation2 + $0x2c] sm:$0x1]  ;;  %v1273_v62 = vshll.u32 %v2758_v22, 16  ;;  %v1662_v1 = vrot.slane %v1660_v49, 1 }
  0x36   : > { %1370 = vrot.lane.b32.xlu1 %v1354_v60, %s2559_s14  ;;  %v1338_v63 = vrot.slane %v2784_v54, 1  ;;  %v633_v4 = vld [vmem:[#allocation2 + $0x14] sm:$0x1]  ;;  %v1793_v5 = vrot.slane %v2334_v52, 1  ;;  %v1642_v7 = vunpack.c.l.b16 %v1578_v61  ;;  %v2517_v8 = vor.u32 %v2516_v50, %v2515_v59  ;;  %v2797_v9 = vld [vmem:[#allocation2 + $0xc] sm:$0xe] }
  0x37   : > { %v1665_v2 = vshll.u32 %v1649_v56, 16  ;;  %v1794_v6 = vrot.slane %v1649_v56, 1  ;;  %s2179_s12 = sshll.u32 %s3478_s10, 1  ;;  %v1271_v11 = vshrl.u32 %v2758_v22, 16  ;;  %v1275_v12 = vrot.slane %v1273_v62, 1  ;;  %v2809_v18 = vld [vmem:[#allocation2 + $0xc] sm:$0xff]  }
  0x38   : > { %v1339_v10 = vsel %vm1025_vm9, %v1337_v55, %v1338_v63  ;;  %v2522_v13 = vld [vmem:[#allocation2 + $0xc] sm:$0xe]  ;;  %v2804_v14 = vpack.c.b16 %v1642_v7, %v1642_v7  ;;  %v1796_v15 = vrot.slane %v2517_v8, 1  ;;  %v1278_v16 = vshll.u32 %v2772_v41, 16  ;;  %v2518_v19 = vld [vmem:[#allocation2 + $0xc] sm:$0xf0]  ;;  %s2818_s17 = sadd.s32 %s2179_s12, %s2686_s15 }
  0x39   : > { %1360 = vrot.lane.b32.xlu0 %v1339_v10, %s2559_s14  ;;  %v634_v17 = vsel %vm2671_vm2, %v481_v40, %v633_v4  ;;  %v2811_v20 = vld [vmem:[#allocation2 + $0xc] sm:$0xff]   ;;  %s3480_s13 = smov (!%p2793_p2, %s364_s13), 15  ;;  %v2815_v23 = vor.u32 %v1662_v1, %v1658_v57  ;;  %v1667_v24 = vrot.slane %v1665_v2, 1  ;;  %v1795_v25 = vsel %vm1025_vm9, %v1793_v5, %v1794_v6  ;;  %v462_v29 = vld [vmem:[%s2698_s8 + $0x3c] sm:$0xf]  ;;  %s2181_s27 = sshll.u32 %s2818_s17, 2 }
  0x3a   : > { %v2521_v21 = vld [vmem:[#allocation2 + $0xc] sm:$0xf0]  ;;  %635 = vst [vmem:[#allocation2 + $0x14] sm:$0x1] %v634_v17  ;;  %v1797_v27 = vrot.slane %v2804_v14, 1  ;;  %s3482_s13 = smov (!%p2793_p2, %s3480_s13), 15  ;;  %v1276_v28 = vor.u32 %v1275_v12, %v1271_v11  ;;  %v2520_v37 = vor.u32 %v2797_v9, %v2518_v19  ;;  %s358_s17 = scalar_lea.vmem %s3447_s1, %s2181_s27 }
  0x3b   : > { %v587_v31 = vrot.slane %v585_v53, 7  ;;  %v1280_v34 = vrot.slane %v1278_v16, 1  ;;  %v1672_v35 = vshll.u32 %v2786_v58, 16  ;;  %s686_s26 = scalar_select %p685_p4, 1, 0  ;;  %v1668_v36 = vsel %vm888_vm10, %v2815_v23, %v1667_v24 }
  0x3c   : > { %v1798_v33 = vsel %vm1025_vm9, %v1796_v15, %v1797_v27  ;;  %v588_v38 = vshll.u32 %v2767_v30, 16  ;;  %s2836_s30 = sshll.u32 %s3482_s13, 1  ;;  %v2523_v39 = vor.u32 %v2522_v13, %v2521_v21  ;;  %v1670_v40 = vshrl.u32 %v2786_v58, 16  ;;  %v678_v42 = vld [vmem:[#allocation2 + $0x60] sm:$0xf]  ;;  %s2560_s16 = smov 3  }
  0x3d   : > { %1819 = vrot.lane.b32.xlu2 %v1798_v33, %s2559_s14  ;;  %v593_v41 = vshrl.u32 %v462_v29, 16  ;;  %s2839_s9 = scvt.s32.f32 %s686_s26  ;;  %v1674_v43 = vrot.slane %v1672_v35, 1  ;;  %v1677_v44 = vshll.u32 %v2804_v14, 16  ;;  %v596_v46 = vshll.u32 %v462_v29, 16  ;;  %v682_v55 = vld [vmem:[#allocation2 + $0x68] sm:$0x1] }
  0x3e   : > { %1817 = vrot.lane.b32.xlu1 %v1795_v25, %s2559_s14  ;;  %v590_v45 = vor.u32 %v588_v38, %v587_v31  ;;  %v1281_v30 = vsel %vm888_vm10, %v1276_v28, %v1280_v34  ;;  %v591_v49 = vrot.slane %v587_v31, 4  ;;  %v1218_v56 = vshll.u32 %v2784_v54, 16  ;;  %v403_v57 = vld [vmem:[#allocation2 + $0x48] sm:$0x1]  ;;  %v435_v59 = vld [vmem:[#allocation2 + $0x50] sm:$0x1] }
  0x3f   : > { %v595_v50 = vrot.slane %v593_v41, 7  ;;  %s690_s26 = sshrl.u32 %s2839_s9, 16  ;;  %v1334_v60 = vrot.slane %v2520_v37, 1  ;;  %v1029_v61 = vrot.slane %v2523_v39, 1  ;;  %v1679_v54 = vrot.slane %v1677_v44, 1  ;;  %p689_p5 = scmp.ne.f32.partialorder %s2839_s9, %s2839_s9  ;;  %v2868_v13 = vld [vmem:[%s358_s17] sm:$0xff]  }
  0x40   : > { %v679_v53 = vsel %vm2717_vm8, %v590_v45, %v678_v42  ;;  %s691_s10 = sand.u32 1, %s690_s26  ;;  %v904_v4 = vshll.u32 %v2811_v20, 16  ;;  %v457_v5 = vld [vmem:[%s2698_s8 + $0x28] sm:$0xf]  ;;  %v458_v6 = vld [vmem:[%s2698_s8 + $0x2c] sm:$0xf]  ;;  %v1675_v7 = vor.u32 %v1674_v43, %v1670_v40  ;;  %v2244_v25 = vunpack.c.l.bf16 %v2868_v13 }
  0x41   : > { %1753 = vrot.lane.b32.xlu0 %v1668_v36, %s2560_s16  ;;  %v1118_v47 = vld [vmem:[#allocation2 + $0x14] sm:$0x1]  ;;  %v598_v62 = vor.u32 %v596_v46, %v595_v50  ;;  %v600_v63 = vrot.slane %v595_v50, 4  ;;  %680 = vst [vmem:[#allocation2 + $0x60] sm:$0xf] %v679_v53  ;;  %s692_s27 = sadd.s32 32767, %s691_s10 }
  0x42   : > { %v809_v48 = vld [vmem:[#allocation2 + $0x14] sm:$0x1]  ;;  %v1182_v51 = vunpack.c.l.b16 %v1118_v47  ;;  %v902_v10 = vshrl.u32 %v2811_v20, 16  ;;  %v385_v11 = vld [vmem:[#allocation2] sm:$0x1]  ;;  %s693_s13 = sadd.s32 %s692_s27, %s2839_s9  ;;  %v2873_v16 = vrot.slane %v1218_v56, 1  ;;  %v1680_v40 = vsel %vm888_vm10, %v1675_v7, %v1679_v54 }
  0x43   : > { %v873_v52 = vunpack.c.l.b16 %v809_v48  ;;  %v599_v8 = vsel %vm2711_vm7, %v591_v49, %v598_v62  ;;  %v683_v9 = vsel %vm2671_vm2, %v600_v63, %v682_v55  ;;  %v417_v12 = vld [vmem:[#allocation2 + $0x8] sm:$0x1]  ;;  %v1199_v17 = vshrl.u32 %v2809_v18, 16  ;;  %s694_s10 = sand.u32 4294901760, %s693_s13  ;;  %v397_v27 = vld [vmem:[#allocation2 + $0x30] sm:$0x1] }
  0x44   : > { %v2853_v1 = vpack.c.b16 %v1182_v51, %v1182_v51  ;;  %681 = vst.msk [vmem:[#allocation2 + $0x64] sm:$0xf] %vm626_vm5, %v599_v8  ;;  %v1201_v19 = vshll.u32 %v2809_v18, 16  ;;  %v404_v21 = vsel %vm2671_vm2, 0, %v403_v57  ;;  %v436_v24 = vsel %vm2679_vm4, 0, %v435_v59  ;;  %s3484_s10 = smov (%p689_p5, %s694_s10), 2143289344 }
  0x45   : > { %v2855_v2 = vpack.c.b16 %v873_v52, %v873_v52  ;;  %684 = vst [vmem:[#allocation2 + $0x68] sm:$0x1] %v683_v9  ;;  %v429_v28 = vld [vmem:[#allocation2 + $0x38] sm:$0x1]  ;;  %v906_v34 = vrot.slane %v904_v4, 1  ;;  %v551_v37 = vshrl.u32 %v457_v5, 16  ;;  %v2245_v47 = vunpack.c.h.bf16 %v2868_v13 }
  0x46   : > { %v1335_v14 = vrot.slane %v2853_v1, 1  ;;  %v2883_v29 = vld [vmem:[%s2698_s8 + $0x18] sm:$0xf]  ;;  %405 = vst [vmem:[#allocation2 + $0x48] sm:$0x1] %v404_v21  ;;  %v1206_v36 = vshll.u32 %v2853_v1, 16 }
  0x47   : > { %v1030_v15 = vrot.slane %v2855_v2, 1  ;;  %v909_v35 = vshll.u32 %v2855_v2, 16  ;;  %437 = vst [vmem:[#allocation2 + $0x50] sm:$0x1] %v436_v24  ;;  %v554_v38 = vshll.u32 %v457_v5, 16  ;;  %v559_v39 = vshrl.u32 %v458_v6, 16 }
  0x48   : > { %v1336_v31 = vsel %vm1025_vm9, %v1334_v60, %v1335_v14  ;;  %v2327_v41 = vld [vmem:[#allocation2 + $0x60] sm:$0xe]  ;;  %v562_v42 = vshll.u32 %v458_v6, 16  ;;  %v386_v43 = vsel %vm2671_vm2, 0, %v385_v11  ;;  %v418_v44 = vsel %vm2679_vm4, 0, %v417_v12  ;;  %s697_s9 = sshrl.u32 %s3484_s10, 16 }
  0x49   : > { %v1031_v33 = vsel %vm1025_vm9, %v1029_v61, %v1030_v15  ;;  %1306 = vrot.lane.b32.xlu0 %v1281_v30, %s2560_s16  ;;  %1358 = vrot.lane.b32.xlu1 %v1336_v31, %s2559_s14  ;;  %v2900_v45 = vrot.slane %v1201_v19, 1  ;;  %v553_v46 = vrot.slane %v551_v37, 7  ;;  %v561_v30 = vrot.slane %v559_v39, 7  ;;  %387 = vst [vmem:[#allocation2] sm:$0x1] %v386_v43  ;;  %s713_s12 = sshll.u32 %s697_s9, 16 }
  0x4a   : > { %1052 = vrot.lane.b32.xlu2 %v1031_v33, %s2559_s14  ;;  %419 = vst [vmem:[#allocation2 + $0x8] sm:$0x1] %v418_v44  ;;  %s714_s17 = sor.u32 %s713_s12, %s697_s9  ;;  %v398_v48 = vsel %vm2671_vm2, 0, %v397_v27  ;;  %v430_v49 = vsel %vm2679_vm4, 0, %v429_v28  ;;  %v517_v50 = vshrl.u32 %v2883_v29, 16  ;;  %v520_v51 = vshll.u32 %v2883_v29, 16 }
  0x4b   : > { %v2326_v52 = vld [vmem:[#allocation2 + $0x60] sm:$0xf0]  ;;  %v556_v55 = vor.u32 %v554_v38, %v553_v46  ;;  %v557_v56 = vrot.slane %v553_v46, 4  ;;  %v564_v57 = vor.u32 %v562_v42, %v561_v30  ;;  %v566_v59 = vrot.slane %v561_v30, 4  ;;  %v454_v60 = vld [vmem:[%s2698_s8 + $0x1c] sm:$0xf] }
  0x4c   : > { %v2316_v53 = vld [vmem:[#allocation2 + $0x60] sm:$0xff]   ;;  %v1125_v61 = vld [vmem:[#allocation2 + $0x68] sm:$0x1]  ;;  %v2328_v62 = vor.u32 %v2327_v41, %v2326_v52  ;;  %v715_v54 = vstv %s714_s17  ;;  %399 = vst [vmem:[#allocation2 + $0x30] sm:$0x1] %v398_v48  ;;  %v519_v8 = vrot.slane %v517_v50, 7  ;;  %v907_v11 = vor.u32 %v906_v34, %v902_v10  ;;  %s3463_s17 = sadd.s32 %s2836_s30, %s2686_s15 }
  0x4d   : > { %v1283_v63 = vshrl.u32 %v2316_v53, 16  ;;  %v1285_v2 = vshll.u32 %v2316_v53, 16  ;;  %v1189_v4 = vunpack.c.l.b16 %v1125_v61  ;;  %v565_v5 = vsel %vm2711_vm7, %v557_v56, %v564_v57  ;;  %v664_v6 = vld [vmem:[#allocation2 + $0x48] sm:$0xf]  ;;  %431 = vst [vmem:[#allocation2 + $0x38] sm:$0x1] %v430_v49 }
  0x4e   : > { %v719_v7 = vunpack.c.l.bf16 %v715_v54  ;;  %v911_v12 = vrot.slane %v909_v35, 1  ;;  %v665_v14 = vsel %vm2717_vm8, %v556_v55, %v664_v6  ;;  %667 = vst.msk [vmem:[#allocation2 + $0x4c] sm:$0xf] %vm626_vm5, %v565_v5  ;;  %v668_v15 = vld [vmem:[#allocation2 + $0x50] sm:$0x1]  ;;  %v1355_v21 = vrot.slane %v2328_v62, 1 }
  0x4f   : > { %v1287_v9 = vrot.slane %v1285_v2, 1  ;;  %v1197_v19 = vpack.c.b16 %v1189_v4, %v1189_v4  ;;  %666 = vst [vmem:[#allocation2 + $0x48] sm:$0xf] %v665_v14  ;;  %v669_v24 = vsel %vm2671_vm2, %v566_v59, %v668_v15  ;;  %v522_v29 = vor.u32 %v520_v51, %v519_v8  ;;  %v432_v14 = vld [vmem:[#allocation2 + $0x44] sm:$0x1]  ;;  %s2241_s15 = sshll.u32 %s2541_s21, 4 }
  0x50   : > { %v720_v27 = vmul.f32 %v2244_v25, %v719_v7  ;;  %670 = vst [vmem:[#allocation2 + $0x50] sm:$0x1] %v669_v24  ;;  %v721_v10 = vmul.f32 %v2245_v47, %v719_v7  ;;  %v525_v31 = vshrl.u32 %v454_v60, 16  ;;  %v528_v37 = vshll.u32 %v454_v60, 16  ;;  %v744_v57 = vld [vmem:[#allocation2] sm:$0xf] }
  0x51   : > { %1755 = vrot.lane.b32.xlu0 %v1680_v40, %s2560_s16  ;;  %v2922_v28 = vor.u32 %v1287_v9, %v1283_v63  ;;  %v1356_v33 = vrot.slane %v1197_v19, 1  ;;  %v1290_v34 = vshll.u32 %v1197_v19, 16  ;;  %v912_v38 = vsel %vm888_vm10, %v907_v11, %v911_v12  ;;  %v748_v2 = vld [vmem:[#allocation2 + $0x8] sm:$0x1]  ;;  %v400_v12 = vld [vmem:[#allocation2 + $0x3c] sm:$0x1] }
  0x52   : > { %v722_v35 = vpack.c.bf16 %v720_v27, %v720_v27  ;;  %v723_v39 = vpack.c.bf16 %v721_v10, %v721_v10  ;;  %v523_v40 = vrot.slane %v519_v8, 4  ;;  %v527_v41 = vrot.slane %v525_v31, 7  ;;  %v2965_v24 = vld [vmem:[#allocation2 + $0x20] sm:$0x1]  ;;  %s2232_s30 = sshll.u32 %s2545_s22, 5 }
  0x53   : > { %v1357_v42 = vsel %vm1025_vm9, %v1355_v21, %v1356_v33  ;;  %v1292_v43 = vrot.slane %v1290_v34, 1  ;;  %v650_v44 = vld [vmem:[#allocation2 + $0x30] sm:$0xf]  ;;  %v1208_v51 = vrot.slane %v1206_v36, 1  ;;  %v1204_v1 = vor.u32 %v2900_v45, %v1199_v17  ;;  %v455_v21 = vld [vmem:[%s2698_s8 + $0x20] sm:$0xf] }
  0x54   : > { %v725_v13 = vshrl.u32 %v722_v35, 16  ;;  %v728_v25 = vshll.u32 %v722_v35, 16  ;;  %1372 = vrot.lane.b32.xlu1 %v1357_v42, %s2559_s14  ;;  %v733_v46 = vshrl.u32 %v723_v39, 16  ;;  %v736_v30 = vshll.u32 %v723_v39, 16  ;;  %v654_v49 = vld [vmem:[#allocation2 + $0x38] sm:$0x1] }
  0x55   : > { %v530_v47 = vor.u32 %v528_v37, %v527_v41  ;;  %v532_v48 = vrot.slane %v527_v41, 4  ;;  %v1293_v50 = vsel %vm888_vm10, %v2922_v28, %v1292_v43  ;;  %v651_v53 = vsel %vm2717_vm8, %v522_v29, %v650_v44  ;;  %v456_v29 = vld [vmem:[%s2698_s8 + $0x24] sm:$0xf]  ;;  %v2975_v37 = vld [vmem:[#allocation2 + $0x24] sm:$0xf0] }
  0x56   : > { %v727_v52 = vrot.slane %v725_v13, 7  ;;  %1308 = vrot.lane.b32.xlu2 %v1293_v50, %s2560_s16  ;;  %v2934_v55 = vld [vmem:[#allocation2 + $0x48] sm:$0xff]   ;;  %v735_v56 = vrot.slane %v733_v46, 7  ;;  %652 = vst [vmem:[#allocation2 + $0x30] sm:$0xf] %v651_v53  ;;  %v1221_v7 = vsel %vm888_vm10, %v2815_v23, %v2873_v16  ;;  %v1209_v16 = vsel %vm888_vm10, %v1204_v1, %v1208_v51 }
  0x57   : > { %v531_v59 = vsel %vm2711_vm7, %v523_v40, %v530_v47  ;;  %v655_v60 = vsel %vm2671_vm2, %v532_v48, %v654_v49  ;;  %v814_v36 = vld [vmem:[#allocation2 + $0x50] sm:$0x1]  ;;  %v964_v61 = vshll.u32 %v2934_v55, 16  ;;  %v962_v4 = vshrl.u32 %v2934_v55, 16  ;;  %v2973_v35 = vld [vmem:[#allocation2 + $0x24] sm:$0xff]  }
  0x58   : > { %v730_v62 = vor.u32 %v728_v25, %v727_v52  ;;  %v731_v63 = vrot.slane %v727_v52, 4  ;;  %v878_v54 = vunpack.c.l.b16 %v814_v36  ;;  %v738_v5 = vor.u32 %v736_v30, %v735_v56  ;;  %653 = vst.msk [vmem:[#allocation2 + $0x34] sm:$0xf] %vm626_vm5, %v531_v59  ;;  %v1120_v48 = vld [vmem:[#allocation2 + $0x2c] sm:$0x1] }
  0x59   : > { %987 = vrot.lane.b32.xlu0 %v912_v38, %s2560_s16  ;;  %v740_v6 = vrot.slane %v735_v56, 4  ;;  %v966_v8 = vrot.slane %v964_v61, 1  ;;  %656 = vst [vmem:[#allocation2 + $0x38] sm:$0x1] %v655_v60  ;;  %v401_v27 = vsel %vm2671_vm2, 0, %v400_v12  ;;  %v433_v10 = vsel %vm2679_vm4, 0, %v432_v14 }
  0x5a   : > { %v745_v17 = vsel %vm2717_vm8, %v730_v62, %v744_v57  ;;  %v2952_v45 = vpack.c.b16 %v878_v54, %v878_v54  ;;  %v739_v9 = vsel %vm2711_vm7, %v731_v63, %v738_v5  ;;  %402 = vst [vmem:[#allocation2 + $0x3c] sm:$0x1] %v401_v27  ;;  %v534_v38 = vshrl.u32 %v455_v21, 16  ;;  %v2310_v56 = vld [vmem:[#allocation2 + $0x48] sm:$0xf0] }
  0x5b   : > { %746 = vst [vmem:[#allocation2] sm:$0xf] %v745_v17  ;;  %v749_v11 = vsel %vm2671_vm2, %v740_v6, %v748_v2  ;;  %v2961_v15 = vor.u32 %v966_v8, %v962_v4  ;;  %v537_v41 = vshll.u32 %v455_v21, 16  ;;  %v542_v42 = vshrl.u32 %v456_v29, 16  ;;  %v2311_v1 = vld [vmem:[#allocation2 + $0x48] sm:$0xe] }
  0x5c   : > { %747 = vst.msk [vmem:[#allocation2 + $0x4] sm:$0xf] %vm626_vm5, %v739_v9  ;;  %1296 = vrot.lane.b32.xlu1 %v1221_v7, %s2560_s16  ;;  %v969_v19 = vshll.u32 %v2952_v45, 16  ;;  %v536_v44 = vrot.slane %v534_v38, 7  ;;  %v545_v46 = vshll.u32 %v456_v29, 16  ;;  %v874_v47 = vunpack.c.l.b16 %v2965_v24 }
  0x5d   : > { %750 = vst [vmem:[#allocation2 + $0x8] sm:$0x1] %v749_v11  ;;  %v2336_v33 = vld [vmem:[#allocation2 + $0x30] sm:$0xe]  ;;  %v544_v50 = vrot.slane %v542_v42, 7  ;;  %vm1431_vm11 = vcmask 1043456  }
  0x5e   : > { %1294 = vrot.lane.b32.xlu2 %v1209_v16, %s2560_s16  ;;  %v971_v31 = vrot.slane %v969_v19, 1  ;;  %434 = vst [vmem:[#allocation2 + $0x44] sm:$0x1] %v433_v10  ;;  %v2304_v36 = vld [vmem:[#allocation2 + $0x18] sm:$0xf0]  ;;  %v539_v61 = vor.u32 %v537_v41, %v536_v44  ;;  %v540_v62 = vrot.slane %v536_v44, 4  ;;  %v2312_v16 = vor.u32 %v2311_v1, %v2310_v56 }
  0x5f   : > { %v2335_v34 = vld [vmem:[#allocation2 + $0x30] sm:$0xf0]  ;;  %v547_v63 = vor.u32 %v545_v46, %v544_v50  ;;  %s699_s8 = scalar_select %p698_p6, 1, 0  ;;  %v549_v5 = vrot.slane %v544_v50, 4  ;;  %v1184_v19 = vunpack.c.l.b16 %v1120_v48  ;;  %v1045_v46 = vrot.slane %v2952_v45, 1 }
  0x60   : > { %v972_v39 = vsel %vm888_vm10, %v2961_v15, %v971_v31  ;;  %v1579_v40 = vld [vmem:[#allocation2 + $0x38] sm:$0x1]  ;;  %v2337_v25 = vor.u32 %v2336_v33, %v2335_v34  ;;  %v2305_v17 = vld [vmem:[#allocation2 + $0x18] sm:$0xe]  ;;  %v2995_v14 = vld [vmem:[#allocation2 + $0x30] sm:$0xff]   ;;  %v3003_v31 = vpack.c.b16 %v874_v47, %v874_v47  ;;  %v1044_v44 = vrot.slane %v2312_v16, 1 }
  0x61   : > { %v1643_v13 = vunpack.c.l.b16 %v1579_v40  ;;  %v657_v6 = vld [vmem:[#allocation2 + $0x3c] sm:$0xf]  ;;  %v548_v9 = vsel %vm2711_vm7, %v540_v62, %v547_v63  ;;  %s2997_s26 = scvt.s32.f32 %s699_s8  ;;  %v2306_v33 = vor.u32 %v2305_v17, %v2304_v36  ;;  %v3005_v34 = vld [vmem:[#allocation2 + $0x54] sm:$0xff]   ;;  %v1682_v42 = vshrl.u32 %v2995_v14, 16  ;;  %s3068_s8 = sshll.u32 %s3463_s17, 2 }
  0x62   : > { %v2302_v43 = vld [vmem:[#allocation2] sm:$0xe]  ;;  %v1799_v2 = vrot.slane %v2337_v25, 1  ;;  %v658_v11 = vsel %vm2717_vm8, %v539_v61, %v657_v6  ;;  %660 = vst.msk [vmem:[#allocation2 + $0x40] sm:$0xf] %vm626_vm5, %v548_v9  ;;  %v1225_v50 = vshll.u32 %v2973_v35, 16 }
  0x63   : > { %v2301_v30 = vld [vmem:[#allocation2] sm:$0xf0]  ;;  %v2983_v53 = vpack.c.b16 %v1643_v13, %v1643_v13  ;;  %659 = vst [vmem:[#allocation2 + $0x3c] sm:$0xf] %v658_v11  ;;  %v3007_v38 = vld [vmem:[#allocation2 + $0x54] sm:$0xf0]  ;;  %p702_p7 = scmp.ne.f32.partialorder %s2997_s26, %s2997_s26 }
  0x64   : > { %v2981_v49 = vld [vmem:[#allocation2] sm:$0xff]   ;;  %v808_v51 = vld [vmem:[#allocation2 + $0x8] sm:$0x1]  ;;  %v2303_v52 = vor.u32 %v2302_v43, %v2301_v30  ;;  %997 = vrot.lane.b32.xlu1 %v972_v39, %s2560_s16  ;;  %v1684_v39 = vshll.u32 %v2995_v14, 16  ;;  %s703_s27 = sshrl.u32 %s2997_s26, 16  ;;  %v3020_v30 = vpack.c.b16 %v1184_v19, %v1184_v19  ;;  %v1223_v1 = vshrl.u32 %v2973_v35, 16 }
  0x65   : > { %v890_v57 = vshrl.u32 %v2981_v49, 16  ;;  %v892_v59 = vshll.u32 %v2981_v49, 16  ;;  %v872_v60 = vunpack.c.l.b16 %v808_v51  ;;  %v1800_v54 = vrot.slane %v2983_v53, 1  ;;  %v661_v12 = vld [vmem:[#allocation2 + $0x44] sm:$0x1]  ;;  %s704_s13 = sand.u32 1, %s703_s27  ;;  %s375_s27 = scalar_lea.vmem %s3448_s2, %s3068_s8 }
  0x66   : > { %v1026_v8 = vrot.slane %v2303_v52, 1  ;;  %v662_v21 = vsel %vm2671_vm2, %v549_v5, %v661_v12  ;;  %v1689_v43 = vshll.u32 %v2983_v53, 16  ;;  %v3013_v13 = vld [vmem:[#allocation2 + $0x24] sm:$0xff]   ;;  %v815_v47 = vld [vmem:[#allocation2 + $0x5c] sm:$0x1]  ;;  %v1686_v48 = vrot.slane %v1684_v39, 1 }
  0x67   : > { %v894_v4 = vrot.slane %v892_v59, 1  ;;  %v880_v7 = vpack.c.b16 %v872_v60, %v872_v60  ;;  %v1801_v29 = vsel %vm1025_vm9, %v1799_v2, %v1800_v54  ;;  %663 = vst [vmem:[#allocation2 + $0x44] sm:$0x1] %v662_v21  ;;  %v3015_v25 = vld [vmem:[#allocation2 + $0x24] sm:$0xf0]  ;;  %s705_s10 = sadd.s32 32767, %s704_s13  ;;  %v879_v45 = vunpack.c.l.b16 %v815_v47 }
  0x68   : > { %v1032_v52 = vrot.slane %v2306_v33, 1  ;;  %v1033_v53 = vrot.slane %v3003_v31, 1  ;;  %v3027_v56 = vor.u32 %v1686_v48, %v1682_v42  ;;  %v811_v59 = vld [vmem:[#allocation2 + $0x2c] sm:$0x1]  ;;  %v1046_v60 = vsel %vm1025_vm9, %v1044_v44, %v1045_v46  ;;  %s706_s9 = sadd.s32 %s705_s10, %s2997_s26  ;;  %v2428_v11 = vld [vmem:[#allocation2 + $0x24] sm:$0xe] }
  0x69   : > { %v1027_v24 = vrot.slane %v880_v7, 1  ;;  %v895_v27 = vor.u32 %v894_v4, %v890_v57  ;;  %v897_v10 = vshll.u32 %v880_v7, 16  ;;  %v1691_v57 = vrot.slane %v1689_v43, 1  ;;  %v3034_v62 = vld [vmem:[#allocation2 + $0x3c] sm:$0xf0]  ;;  %s707_s12 = sand.u32 4294901760, %s706_s9 }
  0x6a   : > { %v1230_v36 = vshll.u32 %v3020_v30, 16  ;;  %v3032_v61 = vld [vmem:[#allocation2 + $0x3c] sm:$0xff]   ;;  %v1227_v63 = vrot.slane %v1225_v50, 1  ;;  %v1034_v54 = vsel %vm1025_vm9, %v1032_v52, %v1033_v53  ;;  %v875_v5 = vunpack.c.l.b16 %v811_v59  ;;  %s3486_s12 = smov (%p702_p7, %s707_s12), 2143289344  ;;  %v1121_v44 = vld [vmem:[#allocation2 + $0x38] sm:$0x1] }
  0x6b   : > { %v1028_v40 = vsel %vm1025_vm9, %v1026_v8, %v1027_v24  ;;  %v899_v41 = vrot.slane %v897_v10, 1  ;;  %v3040_v6 = vpack.c.b16 %v879_v45, %v879_v45  ;;  %v1692_v7 = vsel %vm888_vm10, %v3027_v56, %v1691_v57  ;;  %v2431_v50 = vld [vmem:[#allocation2 + $0x3c] sm:$0xe]  ;;  %s710_s26 = sshrl.u32 %s3486_s12, 16  ;;  %v412_v57 = vld [vmem:[#allocation2 + $0x6c] sm:$0x1] }
  0x6c   : > { %1050 = vrot.lane.b32.xlu0 %v1028_v40, %s2559_s14  ;;  %1821 = vrot.lane.b32.xlu1 %v1801_v29, %s2559_s14  ;;  %v921_v8 = vshll.u32 %v3003_v31, 16  ;;  %v1232_v17 = vrot.slane %v1230_v36, 1  ;;  %v1228_v12 = vor.u32 %v1227_v63, %v1223_v1  ;;  %v1694_v16 = vshrl.u32 %v3032_v61, 16  ;;  %v2320_v59 = vld [vmem:[#allocation2 + $0x30] sm:$0xf0]  ;;  %s753_s13 = sshll.u32 %s710_s26, 16 }
  0x6d   : > { %v900_v51 = vsel %vm888_vm10, %v895_v27, %v899_v41  ;;  %v1696_v19 = vshll.u32 %v3032_v61, 16  ;;  %v976_v21 = vshll.u32 %v3005_v34, 16  ;;  %v3054_v27 = vpack.c.b16 %v875_v5, %v875_v5  ;;  %v2434_v1 = vld [vmem:[#allocation2 + $0x54] sm:$0xe]  ;;  %v444_v36 = vld [vmem:[#allocation2 + $0x74] sm:$0x1]  ;;  %s754_s10 = sor.u32 %s753_s13, %s710_s26 }
  0x6e   : > { %985 = vrot.lane.b32.xlu2 %v900_v51, %s2560_s16  ;;  %v1580_v2 = vld [vmem:[#allocation2 + $0x44] sm:$0x1]  ;;  %v928_v10 = vshll.u32 %v3013_v13, 16  ;;  %v981_v31 = vshll.u32 %v3040_v6, 16  ;;  %v923_v33 = vrot.slane %v921_v8, 1  ;;  %v1233_v40 = vsel %vm888_vm10, %v1228_v12, %v1232_v17  ;;  %v3096_v3 = vld [vmem:[#allocation2 + $0x3c] sm:$0xff]  }
  0x6f   : > { %v1644_v4 = vunpack.c.l.b16 %v1580_v2  ;;  %v1698_v29 = vrot.slane %v1696_v19, 1  ;;  %v974_v42 = vshrl.u32 %v3005_v34, 16  ;;  %v978_v43 = vrot.slane %v976_v21, 1  ;;  %v2321_v2 = vld [vmem:[#allocation2 + $0x30] sm:$0xe]  ;;  %v2247_v17 = vld [vmem:[%s375_s27] sm:$0xff]   ;;  %s2023_s27 = sadd.s32 %s2241_s15, %s2232_s30 }
  0x70   : > { %v926_v46 = vshrl.u32 %v3013_v13, 16  ;;  %v930_v47 = vrot.slane %v928_v10, 1  ;;  %v933_v48 = vshll.u32 %v3054_v27, 16  ;;  %v983_v52 = vrot.slane %v981_v31, 1  ;;  %v3098_v31 = vld [vmem:[#allocation2 + $0x3c] sm:$0xf0] }
  0x71   : > { %v3046_v9 = vpack.c.b16 %v1644_v4, %v1644_v4  ;;  %v1699_v41 = vor.u32 %v1698_v29, %v1694_v16  ;;  %v924_v53 = vsel %vm888_vm10, %v2815_v23, %v923_v33  ;;  %v2429_v45 = vor.u32 %v2428_v11, %v2975_v37  ;;  %s2233_s13 = sshll.u32 %s2023_s27, 2  ;;  %s2468_s27 = scalar_lea.hbm %s3451_s5, 256 }
  0x72   : > { %v979_v63 = vor.u32 %v978_v43, %v974_v42  ;;  %v413_v23 = vsel %vm2671_vm2, 0, %v412_v57  ;;  %v931_v37 = vor.u32 %v930_v47, %v926_v46  ;;  %v935_v4 = vrot.slane %v933_v48, 1  ;;  %v2339_v46 = vld [vmem:[#allocation2 + $0x48] sm:$0xe]  ;;  %v1583_v48 = vld [vmem:[#allocation2 + $0x68] sm:$0x1] }
  0x73   : > { %v1701_v24 = vshll.u32 %v3046_v9, 16  ;;  %v1340_v5 = vrot.slane %v2429_v45, 1  ;;  %414 = vst [vmem:[#allocation2 + $0x6c] sm:$0x1] %v413_v23  ;;  %v445_v8 = vsel %vm2679_vm4, 0, %v444_v36  ;;  %v2322_v12 = vor.u32 %v2321_v2, %v2320_v59  ;;  %v3110_v2 = vld [vmem:[#allocation2 + $0x54] sm:$0xff]  }
  0x74   : > { %1062 = vrot.lane.b32.xlu0 %v1046_v60, %s2559_s14  ;;  %1054 = vrot.lane.b32.xlu1 %v1034_v54, %s2559_s14  ;;  %v1185_v60 = vunpack.c.l.b16 %v1121_v44  ;;  %v2437_v54 = vld [vmem:[#allocation2 + $0x24] sm:$0xe]  ;;  %v984_v16 = vsel %vm888_vm10, %v979_v63, %v983_v52  ;;  %v2432_v19 = vor.u32 %v2431_v50, %v3034_v62  ;;  %446 = vst [vmem:[#allocation2 + $0x74] sm:$0x1] %v445_v8  ;;  %v2248_v10 = vunpack.c.l.bf16 %v2247_v17  ;;  %v1122_v45 = vld [vmem:[#allocation2 + $0x44] sm:$0x1] }
  0x75   : > { %v1703_v39 = vrot.slane %v1701_v24, 1  ;;  %v936_v21 = vsel %vm888_vm10, %v931_v37, %v935_v4  ;;  %v1581_v24 = vld [vmem:[#allocation2 + $0x50] sm:$0x1]  ;;  %v2435_v29 = vor.u32 %v2434_v1, %v3007_v38  ;;  %v2249_v33 = vunpack.c.h.bf16 %v2247_v17  ;;  %v2338_v38 = vld [vmem:[#allocation2 + $0x48] sm:$0xf0] }
  0x76   : > { %1757 = vrot.lane.b32.xlu2 %v1692_v7, %s2560_s16  ;;  %v1341_v7 = vrot.slane %v3020_v30, 1  ;;  %v3089_v11 = vpack.c.b16 %v1185_v60, %v1185_v60  ;;  %v1802_v43 = vrot.slane %v2432_v19, 1  ;;  %v1803_v44 = vrot.slane %v3046_v9, 1 }
  0x77   : > { %v1704_v51 = vsel %vm888_vm10, %v1699_v41, %v1703_v39  ;;  %v755_v39 = vstv %s754_s10  ;;  %v2438_v41 = vor.u32 %v2437_v54, %v3015_v25  ;;  %v1645_v47 = vunpack.c.l.b16 %v1581_v24  ;;  %v3112_v54 = vld [vmem:[#allocation2 + $0x54] sm:$0xf0]  ;;  %s2025_s10 = scalar_lea.hbm %s3451_s5, %s2233_s13 }
  0x78   : > { %v1342_v30 = vsel %vm1025_vm9, %v1340_v5, %v1341_v7  ;;  %v1344_v62 = vrot.slane %v3089_v11, 1  ;;  %v759_v42 = vunpack.c.l.bf16 %v755_v39  ;;  %v1047_v52 = vrot.slane %v2435_v29, 1  ;;  %v1582_v29 = vld [vmem:[#allocation2 + $0x5c] sm:$0x1]  ;;  %s2028_s12 = sshll.u32 %s2025_s10, 4  ;;  %s2029_s12 = int_to_ptr.hbm [resolvable:$true] %s2028_s12 }
  0x79   : > { %v1035_v59 = vrot.slane %v2438_v41, 1  ;;  %v2340_v60 = vor.u32 %v2339_v46, %v2338_v38  ;;  %v1804_v9 = vsel %vm1025_vm9, %v1802_v43, %v1803_v44  ;;  %v1653_v36 = vpack.c.b16 %v1645_v47, %v1645_v47  ;;  %s2462_s17 = sshra.s32 %s2029_s12, 4  ;;  %s2463_s17 = int_to_ptr.hbm [resolvable:$true] %s2462_s17 }
  0x7a   : > { %v760_v50 = vmul.f32 %v2248_v10, %v759_v42  ;;  %v761_v25 = vmul.f32 %v2249_v33, %v759_v42  ;;  %v1647_v63 = vunpack.c.l.b16 %v1583_v48  ;;  %v1242_v5 = vshll.u32 %v3089_v11, 16  ;;  %v785_v10 = vld [vmem:[#allocation2 + $0x6c] sm:$0xf]  ;;  %p2469_p12 = scmp.lt.s32.totalorder %s2463_s17, %s3451_s5 }
  0x7b   : > { %v1805_v17 = vrot.slane %v2340_v60, 1  ;;  %v1249_v11 = vshll.u32 %v3096_v3, 16  ;;  %v1646_v47 = vunpack.c.l.b16 %v1582_v29  ;;  %v1720_v0 = vshll.u32 %v3110_v2, 16 }
  0x7c   : > { %1298 = vrot.lane.b32.xlu0 %v1233_v40, %s2560_s16  ;;  %1759 = vrot.lane.b32.xlu1 %v1704_v51, %s2560_s16  ;;  %v1343_v40 = vrot.slane %v2322_v12, 1  ;;  %v1036_v51 = vrot.slane %v3054_v27, 1  ;;  %v762_v1 = vpack.c.bf16 %v760_v50, %v760_v50  ;;  %v763_v23 = vpack.c.bf16 %v761_v25, %v761_v25 }
  0x7d   : > { %v1186_v27 = vunpack.c.l.b16 %v1122_v45  ;;  %v3118_v19 = vpack.c.b16 %v1647_v63, %v1647_v63  ;;  %v1251_v45 = vrot.slane %v1249_v11, 1  ;;  %v1713_v25 = vshll.u32 %v1653_v36, 16  ;;  %v2342_v63 = vld [vmem:[#allocation2 + $0x60] sm:$0xe] }
  0x7e   : > { %989 = vrot.lane.b32.xlu2 %v924_v53, %s2560_s16  ;;  %v1048_v53 = vrot.slane %v3040_v6, 1  ;;  %v1345_v57 = vsel %vm1025_vm9, %v1343_v40, %v1344_v62  ;;  %v765_v37 = vshrl.u32 %v762_v1, 16  ;;  %v768_v4 = vshll.u32 %v762_v1, 16  ;;  %v789_v40 = vld [vmem:[#allocation2 + $0x74] sm:$0x1] }
  0x7f   : > { %v773_v7 = vshrl.u32 %v763_v23, 16  ;;  %v776_v8 = vshll.u32 %v763_v23, 16  ;;  %v1244_v62 = vrot.slane %v1242_v5, 1  ;;  %v1037_v43 = vsel %vm1025_vm9, %v1035_v59, %v1036_v51  ;;  %v2440_v5 = vld [vmem:[#allocation2 + $0x3c] sm:$0xe] }
  0x80   : > { %v1049_v6 = vsel %vm1025_vm9, %v1047_v52, %v1048_v53  ;;  %v767_v12 = vrot.slane %v765_v37, 7  ;;  %v1737_v46 = vshll.u32 %v3118_v19, 16  ;;  %v1247_v53 = vshrl.u32 %v3096_v3, 16 }
  0x81   : > { %v775_v24 = vrot.slane %v773_v7, 7  ;;  %v1245_v32 = vsel %vm888_vm10, %v3027_v56, %v1244_v62  ;;  %v3143_v59 = vpack.c.b16 %v1646_v47, %v1646_v47  ;;  %v1715_v23 = vrot.slane %v1713_v25, 1 }
  0x82   : > { %v770_v33 = vor.u32 %v768_v4, %v767_v12  ;;  %v771_v39 = vrot.slane %v767_v12, 4  ;;  %v1252_v60 = vor.u32 %v1251_v45, %v1247_v53  ;;  %v1722_v37 = vrot.slane %v1720_v0, 1  ;;  %v2240_v12 = vld [vmem:[%s3449_s3 + $0x10] sm:$0x10] }
  0x83   : > { %v778_v41 = vor.u32 %v776_v8, %v775_v24  ;;  %v780_v42 = vrot.slane %v775_v24, 4  ;;  %vm1432_vm12 = vcmask 1044480   ;;  %vm1066_vm13 = vcmask 23552  }
  0x84   : > { %999 = vrot.lane.b32.xlu0 %v984_v16, %s2560_s16  ;;  %991 = vrot.lane.b32.xlu1 %v936_v21, %s2560_s16  ;;  %v1806_v16 = vrot.slane %v1653_v36, 1  ;;  %v812_v21 = vld [vmem:[#allocation2 + $0x38] sm:$0x1]  ;;  %v786_v38 = vsel %vm2717_vm8, %v770_v33, %v785_v10  ;;  %v2193_v33 = vld [vmem:[%s3449_s3 + $0x8] sm:$0xf]  ;;  %vm1083_vm14 = vcmask 48128  }
  0x85   : > { %v876_v44 = vunpack.c.l.b16 %v812_v21  ;;  %v779_v48 = vsel %vm2711_vm7, %v771_v39, %v778_v41  ;;  %787 = vst [vmem:[#allocation2 + $0x6c] sm:$0xf] %v786_v38  ;;  %v790_v50 = vsel %vm2671_vm2, %v780_v42, %v789_v40  ;;  %v2239_v39 = vld [vmem:[%s3449_s3 + $0x8] sm:$0x10]  ;;  %vm1414_vm15 = vcmask 72704  }
  0x86   : > { %1362 = vrot.lane.b32.xlu2 %v1342_v30, %s2559_s14  ;;  %v3121_v30 = vpack.c.b16 %v1186_v27, %v1186_v27  ;;  %v1807_v52 = vsel %vm1025_vm9, %v1805_v17, %v1806_v16  ;;  %788 = vst.msk [vmem:[#allocation2 + $0x70] sm:$0xf] %vm626_vm5, %v779_v48  ;;  %v1718_v27 = vshrl.u32 %v3110_v2, 16  ;;  %v2219_v17 = vld [vmem:[%s3449_s3 + $0x10] sm:$0xf]  ;;  %v1716_v16 = vsel %vm888_vm10, %v2961_v15, %v1715_v23 }
  0x87   : > { %791 = vst [vmem:[#allocation2 + $0x74] sm:$0x1] %v790_v50  ;;  %v3139_v26 = vpack.c.b16 %v876_v44, %v876_v44  ;;  %v2220_v42 = vor.u32 %v2240_v12, %v2219_v17  ;;  %v2561_v44 = vmov 65535   ;;  %v2194_v48 = vor.u32 %v2239_v39, %v2193_v33  ;;  %v2307_v50 = vld [vmem:[#allocation2 + $0x30] sm:$0xf0] }
  0x88   : > { %v1254_v51 = vshll.u32 %v3121_v30, 16  ;;  %v1723_v29 = vor.u32 %v1722_v37, %v1718_v27  ;;  %v1433_v38 = vsel %vm1431_vm11, 4294967295, %v2561_v44  ;;  %v2446_v23 = vld [vmem:[#allocation2 + $0x3c] sm:$0xe]  ;;  %vm1993_vm0 = vcmask 519168  }
  0x89   : > { %v945_v36 = vshll.u32 %v3139_v26, 16  ;;  %v3174_v47 = vsel %vm1432_vm12, %v1433_v38, 0  ;;  %v1039_v17 = vrot.slane %v3139_v26, 1 }
  0x8a   : > { %v1256_v1 = vrot.slane %v1254_v51, 1  ;;  %v3177_v53 = vand.u32 %v2220_v42, %v3174_v47  ;;  %v2441_v51 = vor.u32 %v2440_v5, %v3098_v31 }
  0x8b   : > { %v947_v11 = vrot.slane %v945_v36, 1 }
  0x8c   : > { %1823 = vrot.lane.b32.xlu0 %v1804_v9, %s2559_s14  ;;  %1364 = vrot.lane.b32.xlu1 %v1345_v57, %s2559_s14  ;;  %v1739_v57 = vrot.slane %v1737_v46, 1  ;;  %v2341_v9 = vld [vmem:[#allocation2 + $0x60] sm:$0xf0]  ;;  %v1257_v8 = vsel %vm888_vm10, %v1252_v60, %v1256_v1  ;;  %v2525_v10 = vld [vmem:[#allocation2 + $0x6c] sm:$0xe]  ;;  %v1812_v46 = vrot.slane %v3118_v19, 1 }
  0x8d   : > { %v2343_v7 = vor.u32 %v2342_v63, %v2341_v9  ;;  %v3160_v21 = vld [vmem:[#allocation2 + $0x6c] sm:$0xff]   ;;  %v948_v45 = vsel %vm888_vm10, %v3027_v56, %v947_v11  ;;  %v2443_v19 = vld [vmem:[#allocation2 + $0x54] sm:$0xe]  ;;  %v3184_v60 = vld [vmem:[#allocation2 + $0x3c] sm:$0xff]   ;;  %1899 = vmatpush.bf16.msra.mxu2 %v3177_v53  ;;  %v1347_v56 = vrot.slane %v3121_v30, 1  ;;  %v1346_v31 = vrot.slane %v2441_v51, 1 }
  0x8e   : > { %1064 = vrot.lane.b32.xlu2 %v1049_v6, %s2559_s14  ;;  %v1740_v4 = vsel %vm888_vm10, %v2922_v28, %v1739_v57  ;;  %v1725_v6 = vshll.u32 %v3143_v59, 16  ;;  %v2524_v28 = vld [vmem:[#allocation2 + $0x6c] sm:$0xf0]  ;;  %v1584_v24 = vld [vmem:[#allocation2 + $0x74] sm:$0x1]  ;;  %v1744_v12 = vshll.u32 %v3160_v21, 16 }
  0x8f   : > { %v1811_v41 = vrot.slane %v2343_v7, 1  ;;  %v2526_v57 = vor.u32 %v2525_v10, %v2524_v28  ;;  %v2445_v1 = vld [vmem:[#allocation2 + $0x3c] sm:$0xf0]  ;;  %v813_v63 = vld [vmem:[#allocation2 + $0x44] sm:$0x1]  ;;  %v1348_v30 = vsel %vm1025_vm9, %v1346_v31, %v1347_v56  ;;  %v1742_v39 = vshrl.u32 %v3160_v21, 16 }
  0x90   : > { %v1727_v40 = vrot.slane %v1725_v6, 1  ;;  %v1123_v6 = vld [vmem:[#allocation2 + $0x50] sm:$0x1] }
  0x91   : > { %v1813_v9 = vsel %vm1025_vm9, %v1811_v41, %v1812_v46  ;;  %v1814_v27 = vrot.slane %v2526_v57, 1  ;;  %v1187_v28 = vunpack.c.l.b16 %v1123_v6  ;;  %v2205_v57 = vld [vmem:[%s3449_s3] sm:$0xf]  ;;  %v2323_v6 = vld [vmem:[#allocation2 + $0x48] sm:$0xf0] }
  0x92   : > { %v1728_v25 = vsel %vm888_vm10, %v1723_v29, %v1727_v40  ;;  %v2447_v29 = vor.u32 %v2446_v23, %v2445_v1  ;;  %v1746_v40 = vrot.slane %v1744_v12, 1  ;;  %v3219_v1 = vld [vmem:[#allocation2 + $0x18] sm:$0xff]  }
  0x93   : > { %v1195_v42 = vpack.c.b16 %v1187_v28, %v1187_v28 }
  0x94   : > { %1056 = vrot.lane.b32.xlu0 %v1037_v43, %s2559_s14  ;;  %1825 = vrot.lane.b32.xlu1 %v1807_v52, %s2559_s14  ;;  %v1648_v43 = vunpack.c.l.b16 %v1584_v24  ;;  %v2308_v52 = vld [vmem:[#allocation2 + $0x30] sm:$0xe]  ;;  %v1747_v38 = vor.u32 %v1746_v40, %v1742_v39 }
  0x95   : > { %v2309_v36 = vor.u32 %v2308_v52, %v2307_v50 }
  0x96   : > { %1300 = vrot.lane.b32.xlu2 %v1245_v32, %s2560_s16  ;;  %v1436_v32 = vand.u32 %v2194_v48, %v3174_v47  ;;  %v1656_v0 = vpack.c.b16 %v1648_v43, %v1648_v43  ;;  %v1041_v43 = vrot.slane %v2447_v29, 1  ;;  %v952_v48 = vshll.u32 %v3184_v60, 16 }
  0x97   : > { %v3170_v62 = vpop.permute.xlu2 %1819 }
  0x98   : > { %1445 = vmatpush.bf16.msra.mxu0 %v1436_v32  ;;  %2344 = vmatpush.bf16.msra.mxu3 %v1436_v32  ;;  %v1815_v37 = vrot.slane %v1656_v0, 1  ;;  %v1749_v41 = vshll.u32 %v1656_v0, 16  ;;  %v954_v23 = vrot.slane %v952_v48, 1 }
  0x9a   : > { %v1816_v24 = vsel %vm1025_vm9, %v1814_v27, %v1815_v37  ;;  %v1751_v46 = vrot.slane %v1749_v41, 1 }
  0x9c   : > { %1765 = vrot.lane.b32.xlu0 %v1740_v4, %s2560_s16  ;;  %1302 = vrot.lane.b32.xlu1 %v1257_v8, %s2560_s16  ;;  %v877_v4 = vunpack.c.l.b16 %v813_v63  ;;  %v1038_v8 = vrot.slane %v2309_v36, 1  ;;  %v1752_v63 = vsel %vm888_vm10, %v1747_v38, %v1751_v46 }
  0x9e   : > { %1761 = vrot.lane.b32.xlu2 %v1716_v16, %s2560_s16  ;;  %v2444_v16 = vor.u32 %v2443_v19, %v3112_v54  ;;  %v885_v11 = vpack.c.b16 %v877_v4, %v877_v4  ;;  %v1040_v33 = vsel %vm1025_vm9, %v1038_v8, %v1039_v17  ;;  %v1809_v54 = vrot.slane %v3143_v59, 1  ;;  %v2238_v19 = vld [vmem:[%s3449_s3] sm:$0x10]  ;;  %v2324_v8 = vld [vmem:[#allocation2 + $0x48] sm:$0xe] }
  0x9f   : > { %v2206_v36 = vor.u32 %v2238_v19, %v2205_v57  ;;  %v2325_v29 = vor.u32 %v2324_v8, %v2323_v6 }
  0xa0   : > { %v1808_v26 = vrot.slane %v2444_v16, 1  ;;  %v1042_v44 = vrot.slane %v885_v11, 1  ;;  %v957_v0 = vshll.u32 %v885_v11, 16 }
  0xa1   : > { %v1509_v27 = vand.u32 %v2206_v36, %v3174_v47 }
  0xa2   : > { %v1810_v52 = vsel %vm1025_vm9, %v1808_v26, %v1809_v54  ;;  %v1043_v32 = vsel %vm1025_vm9, %v1041_v43, %v1042_v44  ;;  %v959_v4 = vrot.slane %v957_v0, 1  ;;  %v2425_v54 = vld [vmem:[#allocation2 + $0x60] sm:$0xff]  }
  0xa3   : > { %1518 = vmatpush.bf16.msra.mxu1 %v1509_v27  ;;  %2345 = vmatpush.bf16.msrb.mxu3 %v1509_v27 }
  0xa4   : > { %993 = vrot.lane.b32.xlu0 %v948_v45, %s2560_s16  ;;  %1763 = vrot.lane.b32.xlu1 %v1728_v25, %s2560_s16  ;;  %v3192_v5 = vpop.permute.xlu2 %1052  ;;  %v1266_v45 = vshll.u32 %v1195_v42, 16  ;;  %v950_v25 = vshrl.u32 %v3184_v60, 16 }
  0xa6   : > { %1829 = vrot.lane.b32.xlu2 %v1813_v9, %s2559_s14  ;;  %v1268_v31 = vrot.slane %v1266_v45, 1  ;;  %v955_v37 = vor.u32 %v954_v23, %v950_v25 }
  0xa8   : > { %v3194_v7 = vpop.permute.xlu1 %1370  ;;  %v1269_v17 = vsel %vm888_vm10, %v2961_v15, %v1268_v31  ;;  %v960_v11 = vsel %vm888_vm10, %v955_v37, %v959_v4 }
  0xab   : > { %v3201_v10 = vpop.permute.xlu0 %1360 }
  0xac   : > { %1366 = vrot.lane.b32.xlu0 %v1348_v30, %s2559_s14  ;;  %1831 = vrot.lane.b32.xlu1 %v1816_v24, %s2559_s14 }
  0xae   : > { %1058 = vrot.lane.b32.xlu2 %v1040_v33, %s2559_s14 }
  0xb0   : > { %v1818_v50 = vpop.permute.xlu1 %1817  ;;  %v1309_v51 = vpop.permute.xlu2 %1308 }
  0xb3   : > { %v1754_v59 = vpop.permute.xlu0 %1753 }
  0xb4   : > { %v1834_v9 = vsel %vm1066_vm13, %v3219_v1, %v1754_v59  ;;  %1827 = vrot.lane.b32.xlu0 %v1810_v52, %s2559_s14  ;;  %1060 = vrot.lane.b32.xlu1 %v1043_v32, %s2559_s14 }
  0xb5   : > { %v1850_v56 = vsel %vm1083_vm14, %v1834_v9, %v1818_v50 }
  0xb6   : > { %2221 = vmatmul.msk.bf16.vlgmr.msra.gmra.mxu2 %vm1414_vm15, %v1850_v56  ;;  %1767 = vrot.lane.b32.xlu2 %v1752_v63, %s2560_s16 }
  0xb8   : > { %v1295_v12 = vpop.permute.xlu2 %1294 }
  0xb9   : > { %v1375_v30 = vsel %vm1066_vm13, %v2809_v18, %v1295_v12  ;;  %v1349_v18 = vrot.slane %v2325_v29, 1 }
  0xbb   : > { %v1307_v16 = vpop.permute.xlu0 %1306  ;;  %v1359_v28 = vpop.permute.xlu1 %1358 }
  0xbc   : > { %v1387_v47 = vsel %vm1066_vm13, %v2758_v22, %v1307_v16  ;;  %v1391_v24 = vsel %vm1083_vm14, %v1375_v30, %v1359_v28  ;;  %1304 = vrot.lane.b32.xlu0 %v1269_v17, %s2560_s16  ;;  %v1350_v22 = vrot.slane %v1195_v42, 1 }
  0xbd   : > { %2195 = vmatmul.msk.bf16.vlgmr.msra.gmra.mxu0 %vm1414_vm15, %v1391_v24  ;;  %v1403_v15 = vsel %vm1083_vm14, %v1387_v47, %v3194_v7  ;;  %v2426_v47 = vld [vmem:[#allocation2 + $0x48] sm:$0xff]  }
  0xbe   : > { %2201 = vmatmul.msk.bf16.vlgmr.msra.gmra.mxu3 %vm1414_vm15, %v1403_v15  ;;  %995 = vrot.lane.b32.xlu2 %v960_v11, %s2560_s16  ;;  %v1351_v40 = vsel %vm1025_vm9, %v1349_v18, %v1350_v22 }
  0xbf   : > { %2346 = vmatpush.bf16.msra.mxu3 %v3177_v53  ;;  %v1389_v53 = vsel %vm1066_vm13, %v2425_v54, %v1309_v51 }
  0xc3   : > { %v1756_v33 = vpop.permute.xlu0 %1755 }
  0xc4   : > { %v1836_v39 = vsel %vm1066_vm13, %v2786_v58, %v1756_v33 }
  0xc5   : > { %v1852_v41 = vsel %vm1083_vm14, %v1836_v39, %v3170_v62 }
  0xc6   : > { %2222 = vmatmul.msk.bf16.gmra.mxu2 %vm1414_vm15, %v1852_v41  ;;  %1368 = vrot.lane.b32.xlu2 %v1351_v40, %s2559_s14  ;;  %v1373_v7 = vpop.permute.xlu1 %1372  ;;  %s332_s14 = sand.u32 1, %s2533_s19  }
  0xc7   : > { %v1405_v42 = vsel %vm1083_vm14, %v1389_v53, %v1373_v7  ;;  %s2167_s8 = sshll.u32 %s332_s14, 6  ;;  %s2011_s16 = scalar_lea.sflag [#allocation4], %s332_s14 }
  0xc8   : > { %v986_v26 = vpop.permute.xlu2 %985  ;;  %s3347_s26 = scalar_lea.vmem [#allocation3], %s2167_s8  ;;  %s2464_s8 = scalar_lea.hbm %s2463_s17, 64 }
  0xc9   : > { %v1068_v50 = vsel %vm1066_vm13, %v2981_v49, %v986_v26  ;;  %s2026_s9 = sshll.u32 %s3347_s26, 4  ;;  %p2465_p9 = scmp.ne.s32.totalorder %s2463_s17, %s2464_s8  ;;  %s2027_s9 = int_to_ptr.vmem [resolvable:$true] %s2026_s9 }
  0xca   : > { %p2470_p13 = scmp.lt.s32.totalorder %s2468_s27, %s2464_s8 }
  0xcb   : > { %v988_v38 = vpop.permute.xlu0 %987  ;;  %p2466_p10 = pnand %p2465_p9, %p2645_p3 }
  0xcc   : > { %v1070_v9 = vsel %vm1066_vm13, %v2811_v20, %v988_v38  ;;  %p2471_p0 = por %p2470_p13, %p2469_p12 }
  0xcd   : > { %v1087_v36 = vsel %vm1083_vm14, %v1070_v9, %v3192_v5  ;;  %v3340_v9 = vld [vmem:[%s3450_s4] ss:$0 sm:$0xff]  ;;  %p2467_p11 = pneg %p2466_p10 }
  0xce   : > { %2202 = vmatmul.msk.bf16.gmra.mxu3 %vm1414_vm15, %v1405_v42  ;;  %v1297_v43 = vpop.permute.xlu1 %1296 }
  0xcf   : > { %v1377_v58 = vsel %vm1066_vm13, %v3219_v1, %v1297_v43  ;;  %p2472_p1 = pnand %p2471_p0, %p2467_p11 }
  0xd0   : > { %v1758_v44 = vpop.permute.xlu2 %1757  ;;  %v1393_v62 = vsel %vm1083_vm14, %v1377_v58, %v3201_v10 }
  0xd1   : > { %2196 = vmatmul.msk.bf16.gmra.mxu0 %vm1414_vm15, %v1393_v62  ;;  %v1838_v45 = vsel %vm1066_vm13, %v2995_v14, %v1758_v44 }
  0xd6   : > { %v998_v46 = vpop.permute.xlu1 %997 }
  0xd7   : > { %v1080_v25 = vsel %vm1066_vm13, %v2934_v55, %v998_v46 }
  0xd8   : > { %v990_v48 = vpop.permute.xlu2 %989 }
  0xd9   : > { %v1072_v5 = vsel %vm1066_vm13, %v3219_v1, %v990_v48 }
  0xde   : > { %v1051_v52 = vpop.permute.xlu0 %1050  ;;  %v1822_v32 = vpop.permute.xlu1 %1821 }
  0xdf   : > { %v1085_v51 = vsel %vm1083_vm14, %v1068_v50, %v1051_v52  ;;  %v1854_v59 = vsel %vm1083_vm14, %v1838_v45, %v1822_v32 }
  0xe0   : > { %2207 = vmatmul.msk.bf16.vlgmr.msra.gmra.mxu1 %vm1414_vm15, %v1085_v51  ;;  %v1363_v10 = vpop.permute.xlu2 %1362  ;;  %2223 = vmatmul.msk.bf16.gmra.mxu2 %vm1414_vm15, %v1854_v59 }
  0xe6   : > { %v1063_v0 = vpop.permute.xlu0 %1062  ;;  %v1055_v57 = vpop.permute.xlu1 %1054 }
  0xe7   : > { %v1097_v49 = vsel %vm1083_vm14, %v1080_v25, %v1063_v0  ;;  %v1089_v12 = vsel %vm1083_vm14, %v1072_v5, %v1055_v57 }
  0xe8   : > { %2213 = vmatmul.msk.bf16.vlgmr.msrb.gmra.mxu3 %vm1414_vm15, %v1097_v49  ;;  %v1065_v19 = vpop.permute.xlu2 %1064 }
  0xee   : > { %v1299_v63 = vpop.permute.xlu0 %1298  ;;  %v1760_v56 = vpop.permute.xlu1 %1759 }
  0xef   : > { %v1379_v23 = vsel %vm1066_vm13, %v2973_v35, %v1299_v63  ;;  %v1840_v6 = vsel %vm1066_vm13, %v3032_v61, %v1760_v56 }
  0xf0   : > { %2208 = vmatmul.msk.bf16.gmra.mxu1 %vm1414_vm15, %v1087_v36  ;;  %v1395_v55 = vsel %vm1083_vm14, %v1379_v23, %v1363_v10  ;;  %v1301_v31 = vpop.permute.xlu2 %1300 }
  0xf1   : > { %2197 = vmatmul.msk.bf16.gmra.mxu0 %vm1414_vm15, %v1395_v55  ;;  %v1381_v17 = vsel %vm1066_vm13, %v2995_v14, %v1301_v31 }
  0xf6   : > { %v1000_v27 = vpop.permute.xlu0 %999  ;;  %v992_v20 = vpop.permute.xlu1 %991 }
  0xf7   : > { %v1082_v37 = vsel %vm1066_vm13, %v3005_v34, %v1000_v27  ;;  %v1074_v29 = vsel %vm1066_vm13, %v3013_v13, %v992_v20 }
  0xf8   : > { %v1099_v4 = vsel %vm1083_vm14, %v1082_v37, %v1065_v19  ;;  %v1762_v35 = vpop.permute.xlu2 %1761 }
  0xf9   : > { %2214 = vmatmul.msk.bf16.gmra.mxu3 %vm1414_vm15, %v1099_v4  ;;  %v1842_v24 = vsel %vm1066_vm13, %v2426_v47, %v1762_v35 }
  0xfe   : > { %v1824_v8 = vpop.permute.xlu0 %1823  ;;  %v1365_v30 = vpop.permute.xlu1 %1364 }
  0xff   : > { %v1856_v34 = vsel %vm1083_vm14, %v1840_v6, %v1824_v8  ;;  %v1397_v16 = vsel %vm1083_vm14, %v1381_v17, %v1365_v30 }
 0x100   : > { %2209 = vmatmul.msk.bf16.gmra.mxu1 %vm1414_vm15, %v1089_v12  ;;  %2224 = vmatmul.msk.bf16.gmra.mxu2 %vm1414_vm15, %v1856_v34  ;;  %v1830_v1 = vpop.permute.xlu2 %1829 }
 0x101   : > { %2198 = vmatmul.msk.bf16.gmra.mxu0 %vm1414_vm15, %v1397_v16 }
 0x106   : > { %v1057_v28 = vpop.permute.xlu0 %1056  ;;  %v1826_v61 = vpop.permute.xlu1 %1825 }
 0x107   : > { %v1858_v11 = vsel %vm1083_vm14, %v1842_v24, %v1826_v61  ;;  %v1091_v22 = vsel %vm1083_vm14, %v1074_v29, %v1057_v28 }
 0x108   : > { %v1059_v39 = vpop.permute.xlu2 %1058 }
 0x10e   : > { %v1766_v15 = vpop.permute.xlu0 %1765  ;;  %v1303_v33 = vpop.permute.xlu1 %1302 }
 0x10f   : > { %v1846_v18 = vsel %vm1066_vm13, %v2425_v54, %v1766_v15  ;;  %v1383_v54 = vsel %vm1066_vm13, %v3096_v3, %v1303_v33 }
 0x110   : > { %v1862_v40 = vsel %vm1083_vm14, %v1846_v18, %v1830_v1  ;;  %2210 = vmatmul.msk.bf16.gmra.mxu1 %vm1414_vm15, %v1091_v22  ;;  %2225 = vmatmul.msk.bf16.gmra.mxu2 %vm1414_vm15, %v1858_v11  ;;  %v1768_v26 = vpop.permute.xlu2 %1767 }
 0x111   : > { %2227 = vmatmul.msk.bf16.vlgmr.msra.gmra.mxu3 %vm1414_vm15, %v1862_v40  ;;  %v1848_v42 = vsel %vm1066_vm13, %v3160_v21, %v1768_v26 }
 0x116   : > { %v994_v41 = vpop.permute.xlu0 %993  ;;  %v1764_v7 = vpop.permute.xlu1 %1763 }
 0x117   : > { %v1076_v13 = vsel %vm1066_vm13, %v2995_v14, %v994_v41  ;;  %v1844_v3 = vsel %vm1066_vm13, %v3110_v2, %v1764_v7 }
 0x118   : > { %v1093_v58 = vsel %vm1083_vm14, %v1076_v13, %v1059_v39  ;;  %v996_v14 = vpop.permute.xlu2 %995 }
 0x119   : > { %v1078_v48 = vsel %vm1066_vm13, %v3184_v60, %v996_v14 }
 0x11e   : > { %v1367_v53 = vpop.permute.xlu0 %1366  ;;  %v1832_v44 = vpop.permute.xlu1 %1831 }
 0x11f   : > { %v1399_v43 = vsel %vm1083_vm14, %v1383_v54, %v1367_v53  ;;  %v1864_v62 = vsel %vm1083_vm14, %v1848_v42, %v1832_v44 }
 0x120   : > { %2199 = vmatmul.msk.bf16.gmra.mxu0 %vm1414_vm15, %v1399_v43  ;;  %2211 = vmatmul.msk.bf16.gmra.mxu1 %vm1414_vm15, %v1093_v58  ;;  %v1369_v50 = vpop.permute.xlu2 %1368 }
 0x121   : > { %2228 = vmatmul.msk.bf16.gmra.mxu3 %vm1414_vm15, %v1864_v62 }
 0x126   : > { %v1828_v38 = vpop.permute.xlu0 %1827  ;;  %v1061_v46 = vpop.permute.xlu1 %1060 }
 0x127   : > { %v1860_v21 = vsel %vm1083_vm14, %v1844_v3, %v1828_v38  ;;  %v1095_v52 = vsel %vm1083_vm14, %v1078_v48, %v1061_v46 }
 0x128   : > { %2226 = vmatmul.msk.bf16.gmra.mxu2 %vm1414_vm15, %v1860_v21 }
 0x12e   : > { %v1305_v45 = vpop.permute.xlu0 %1304 }
 0x12f   : > { %v1385_v51 = vsel %vm1066_vm13, %v2426_v47, %v1305_v45 }
 0x130   : > { %2212 = vmatmul.msk.bf16.gmra.mxu1 %vm1414_vm15, %v1095_v52  ;;  %v1401_v2 = vsel %vm1083_vm14, %v1385_v51, %v1369_v50 }
 0x131   : > { %2200 = vmatmul.msk.bf16.gmra.mxu0 %vm1414_vm15, %v1401_v2 }
 0x139   : > { %v1901_v59 = vpop.f32.mrf.mxu2 }
 0x13a   : > { %v1447_v25 = vpop.f32.mrf.mxu0 }
 0x141   : > { %v3330_v32 = vpop.f32.mrf.mxu3  ;;  %v1903_v60 = vpop.f32.mrf.mxu2 }
 0x142   : > { %v1449_v49 = vpop.f32.mrf.mxu0 }
 0x149   : > { %v3332_v10 = vpop.f32.mrf.mxu3  ;;  %v1906_v36 = vpop.f32.mrf.mxu2 }
 0x14e   : > { %v1452_v37 = vpop.f32.mrf.mxu0 }
 0x151   : > { %v3334_v0 = vpop.f32.mrf.mxu3  ;;  %v1908_v6 = vpop.f32.mrf.mxu2 }
 0x156   : > { %v1454_v34 = vpop.f32.mrf.mxu0 }
 0x159   : > { %v3345_v55 = vpop.f32.mrf.mxu3 }
 0x15d   : > { %v1520_v57 = vpop.f32.mrf.mxu1 }
 0x15e   : > { %v1521_v19 = vadd.f32 %v1520_v57, %v1447_v25 }
 0x160   : > { %v1941_v63 = vadd.f32 %v1901_v59, %v1521_v19 }
 0x162   : > { %v1961_v23 = vadd.f32 %v3340_v9, %v1941_v63 }
 0x163   : > { %v1911_v28 = vpop.f32.mrf.mxu2 }
 0x164   : > { %v1977_v56 = vpack.c.bf16 %v1961_v23, %v1961_v23 }
 0x165   : > { %v1522_v31 = vpop.f32.mrf.mxu1 }
 0x166   : > { %1994 = vst.msk [vmem:[%s3347_s26] sm:$0xf] %vm1993_vm0, %v1977_v56  ;;  %v1523_v27 = vadd.f32 %v1522_v31, %v1449_v49 }
 0x168   : > { %v1942_v20 = vadd.f32 %v1903_v60, %v1523_v27 }
 0x16a   : > { %v1962_v4 = vadd.f32 %v3340_v9, %v1942_v20 }
 0x16b   : > { %v1550_v8 = vpop.f32.mrf.mxu3  ;;  %v1913_v33 = vpop.f32.mrf.mxu2 }
 0x16c   : > { %v1978_v35 = vpack.c.bf16 %v1962_v4, %v1962_v4  ;;  %v1551_v48 = vadd.f32 %v1550_v8, %v3330_v32 }
 0x16d   : > { %v1525_v5 = vpop.f32.mrf.mxu1 }
 0x16e   : > { %1995 = vst.msk [vmem:[%s3347_s26 + $0x4] sm:$0xf] %vm1993_vm0, %v1978_v35  ;;  %v1526_v17 = vadd.f32 %v1525_v5, %v1452_v37  ;;  %v1457_v11 = vpop.f32.mrf.mxu0 }
 0x170   : > { %v1943_v12 = vadd.f32 %v1906_v36, %v1526_v17 }
 0x172   : > { %v1963_v30 = vadd.f32 %v3340_v9, %v1943_v12 }
 0x173   : > { %v1552_v47 = vpop.f32.mrf.mxu3 }
 0x174   : > { %v1979_v16 = vpack.c.bf16 %v1963_v30, %v1963_v30  ;;  %v1553_v19 = vadd.f32 %v1552_v47, %v3332_v10 }
 0x175   : > { %v1527_v1 = vpop.f32.mrf.mxu1 }
 0x176   : > { %1996 = vst.msk [vmem:[%s3347_s26 + $0x8] sm:$0xf] %vm1993_vm0, %v1979_v16  ;;  %v1528_v61 = vadd.f32 %v1527_v1, %v1454_v34  ;;  %v1459_v7 = vpop.f32.mrf.mxu0 }
 0x178   : > { %v1944_v24 = vadd.f32 %v1908_v6, %v1528_v61 }
 0x17a   : > { %v1964_v29 = vadd.f32 %v3340_v9, %v1944_v24 }
 0x17c   : > { %v1980_v15 = vpack.c.bf16 %v1964_v29, %v1964_v29  ;;  %v1555_v40 = vpop.f32.mrf.mxu3 }
 0x17d   : > { %v1530_v18 = vpop.f32.mrf.mxu1  ;;  %v1556_v10 = vadd.f32 %v1555_v40, %v3334_v0 }
 0x17e   : > { %1997 = vst.msk [vmem:[%s3347_s26 + $0xc] sm:$0xf] %vm1993_vm0, %v1980_v15  ;;  %v1531_v22 = vadd.f32 %v1530_v18, %v1457_v11  ;;  %v1462_v58 = vpop.f32.mrf.mxu0 }
 0x180   : > { %v1945_v39 = vadd.f32 %v1911_v28, %v1531_v22 }
 0x182   : > { %v1965_v41 = vadd.f32 %v3340_v9, %v1945_v39 }
 0x183   : > { %v1916_v53 = vpop.f32.mrf.mxu2 }
 0x184   : > { %v1981_v26 = vpack.c.bf16 %v1965_v41, %v1965_v41  ;;  %v1557_v44 = vpop.f32.mrf.mxu3 }
 0x185   : > { %v1532_v13 = vpop.f32.mrf.mxu1  ;;  %v1558_v61 = vadd.f32 %v1557_v44, %v3345_v55 }
 0x186   : > { %1998 = vst.msk [vmem:[%s3347_s26 + $0x10] sm:$0xf] %vm1993_vm0, %v1981_v26  ;;  %v1533_v54 = vadd.f32 %v1532_v13, %v1459_v7  ;;  %v1464_v45 = vpop.f32.mrf.mxu0 }
 0x188   : > { %v1946_v42 = vadd.f32 %v1913_v33, %v1533_v54 }
 0x18a   : > { %v1966_v43 = vadd.f32 %v3340_v9, %v1946_v42 }
 0x18b   : > { %v1918_v21 = vpop.f32.mrf.mxu2 }
 0x18c   : > { %v1982_v62 = vpack.c.bf16 %v1966_v43, %v1966_v43 }
 0x18d   : > { %v1535_v14 = vpop.f32.mrf.mxu1 }
 0x18e   : > { %1999 = vst.msk [vmem:[%s3347_s26 + $0x14] sm:$0xf] %vm1993_vm0, %v1982_v62  ;;  %v1536_v3 = vadd.f32 %v1535_v14, %v1462_v58 }
 0x190   : > { %v1947_v38 = vadd.f32 %v1916_v53, %v1536_v3 }
 0x192   : > { %v1967_v46 = vadd.f32 %v3340_v9, %v1947_v38 }
 0x193   : > { %v1921_v32 = vpop.f32.mrf.mxu2 }
 0x194   : > { %v1983_v50 = vpack.c.bf16 %v1967_v46, %v1967_v46  ;;  %v1931_v52 = vpop.f32.mrf.mxu3 }
 0x195   : > { %v1953_v51 = vadd.f32 %v1931_v52, %v1551_v48  ;;  %v1537_v2 = vpop.f32.mrf.mxu1 }
 0x196   : > { %2000 = vst.msk [vmem:[%s3347_s26 + $0x18] sm:$0xf] %vm1993_vm0, %v1983_v50  ;;  %v1538_v59 = vadd.f32 %v1537_v2, %v1464_v45 }
 0x197   : > { %v1973_v25 = vadd.f32 %v3340_v9, %v1953_v51 }
 0x198   : > { %v1948_v60 = vadd.f32 %v1918_v21, %v1538_v59 }
 0x199   : > { %v1989_v49 = vpack.c.bf16 %v1973_v25, %v1973_v25 }
 0x19a   : > { %v1968_v57 = vadd.f32 %v3340_v9, %v1948_v60 }
 0x19b   : > { %2006 = vst.msk [vmem:[%s3347_s26 + $0x30] sm:$0xf] %vm1993_vm0, %v1989_v49  ;;  %v1923_v34 = vpop.f32.mrf.mxu2 }
 0x19c   : > { %v1984_v63 = vpack.c.bf16 %v1968_v57, %v1968_v57  ;;  %v1933_v23 = vpop.f32.mrf.mxu3 }
 0x19d   : > { %v1954_v36 = vadd.f32 %v1933_v23, %v1553_v19  ;;  %v1467_v56 = vpop.f32.mrf.mxu0  ;;  %v1540_v31 = vpop.f32.mrf.mxu1 }
 0x19e   : > { %2001 = vst.msk [vmem:[%s3347_s26 + $0x1c] sm:$0xf] %vm1993_vm0, %v1984_v63  ;;  %v1541_v27 = vadd.f32 %v1540_v31, %v1467_v56 }
 0x19f   : > { %v1974_v37 = vadd.f32 %v3340_v9, %v1954_v36 }
 0x1a0   : > { %v1949_v20 = vadd.f32 %v1921_v32, %v1541_v27 }
 0x1a1   : > { %v1990_v4 = vpack.c.bf16 %v1974_v37, %v1974_v37 }
 0x1a2   : > { %v1969_v35 = vadd.f32 %v3340_v9, %v1949_v20 }
 0x1a3   : > { %2007 = vst.msk [vmem:[%s3347_s26 + $0x34] sm:$0xf] %vm1993_vm0, %v1990_v4 }
 0x1a4   : > { %v1985_v5 = vpack.c.bf16 %v1969_v35, %v1969_v35  ;;  %v1936_v6 = vpop.f32.mrf.mxu3 }
 0x1a5   : > { %v1469_v8 = vpop.f32.mrf.mxu0  ;;  %v1542_v17 = vpop.f32.mrf.mxu1  ;;  %v1955_v12 = vadd.f32 %v1936_v6, %v1556_v10 }
 0x1a6   : > { %2002 = vst.msk [vmem:[%s3347_s26 + $0x20] sm:$0xf] %vm1993_vm0, %v1985_v5  ;;  %v1543_v30 = vadd.f32 %v1542_v17, %v1469_v8 }
 0x1a7   : > { %v1975_v16 = vadd.f32 %v3340_v9, %v1955_v12 }
 0x1a8   : > { %v1950_v1 = vadd.f32 %v1923_v34, %v1543_v30 }
 0x1a9   : > { %v1991_v28 = vpack.c.bf16 %v1975_v16, %v1975_v16 }
 0x1aa   : > { %v1970_v0 = vadd.f32 %v3340_v9, %v1950_v1 }
 0x1ab   : > { %2008 = vst.msk [vmem:[%s3347_s26 + $0x38] sm:$0xf] %vm1993_vm0, %v1991_v28  ;;  %v1926_v15 = vpop.f32.mrf.mxu2 }
 0x1ac   : > { %v1986_v47 = vpack.c.bf16 %v1970_v0, %v1970_v0  ;;  %v1938_v24 = vpop.f32.mrf.mxu3 }
 0x1ad   : > { %v1545_v11 = vpop.f32.mrf.mxu1  ;;  %v1956_v29 = vadd.f32 %v1938_v24, %v1558_v61 }
 0x1ae   : > { %2003 = vst.msk [vmem:[%s3347_s26 + $0x24] sm:$0xf] %vm1993_vm0, %v1986_v47  ;;  %v1472_v18 = vpop.f32.mrf.mxu0 }
 0x1af   : > { %v1546_v22 = vadd.f32 %v1545_v11, %v1472_v18  ;;  %v1976_v33 = vadd.f32 %v3340_v9, %v1956_v29 }
 0x1b1   : > { %v1951_v55 = vadd.f32 %v1926_v15, %v1546_v22  ;;  %v1992_v39 = vpack.c.bf16 %v1976_v33, %v1976_v33 }
 0x1b3   : > { %v1971_v40 = vadd.f32 %v3340_v9, %v1951_v55  ;;  %2009 = vst.msk [vmem:[%s3347_s26 + $0x3c] sm:$0xf] %vm1993_vm0, %v1992_v39  ;;  %v1928_v54 = vpop.f32.mrf.mxu2 }
 0x1b5   : > { %v1987_v41 = vpack.c.bf16 %v1971_v40, %v1971_v40  ;;  %v1547_v7 = vpop.f32.mrf.mxu1 }
 0x1b6   : > { %v1474_v26 = vpop.f32.mrf.mxu0 }
 0x1b7   : > { %2004 = vst.msk [vmem:[%s3347_s26 + $0x28] sm:$0xf] %vm1993_vm0, %v1987_v41  ;;  %v1548_v13 = vadd.f32 %v1547_v7, %v1474_v26 }
 0x1b9   : > { %v1952_v53 = vadd.f32 %v1928_v54, %v1548_v13 }
 0x1bb   : > { %v1972_v42 = vadd.f32 %v3340_v9, %v1952_v53 }
 0x1bd   : > { %v1988_v43 = vpack.c.bf16 %v1972_v42, %v1972_v42 }
 0x1bf   : > { %2005 = vst.msk [vmem:[%s3347_s26 + $0x2c] sm:$0xf] %vm1993_vm0, %v1988_v43 }
 0x1c0   : > { %2475 = shalt.err (!%p2472_p1)
}
 0x1c1   : > { %s2562_s14 = smov 64   ;;  %s2563_s26 = smov 4  }
 0x1c2   : > { %2347 = dma.vmem_to_hbm [thread:$0]  (%p2645_p3), %s2027_s9, 1024, %s2029_s12, %s2011_s16, %s2562_s14, %s2562_s14, %s2563_s26  }
 0x1c3 PF: > { %p2353_p2 = scmp.ge.s32.totalorder %s2557_s25, 2  ;;  %s2043_s22 = sand.u32 1, %s2529_s18  }
 0x1c4   : > { %s2044_s10 = scalar_lea.sflag [#allocation4], %s2043_s22 }
 0x1c5   : > { %p2350_p4 = pnand %p2353_p2, %p2654_p8 }
 0x1c7   : > { %p2351_p5 = pneg %p2350_p4 }
 0x1c9   : > { %2509 = dma.done.wait (%p2351_p5), %s2044_s10, 1024  }
 0x1ca   : > { %2511 = vsyncadd (%p2351_p5), %s2044_s10, 4294966272  ;;  %s18_s25 = sadd.s32 1, %s2557_s25   ;;  %s3464_s18 = smov %s2533_s19 }
 0x1cb   : > { %p15_p6 = scmp.ge.s32.totalorder %s18_s25, 6   ;;  %s3465_s19 = smov %s2537_s20 }
 0x1cc   : > { %s3466_s20 = smov %s2663_s11  ;;  %s3467_s21 = smov %s2549_s23 }
 0x1cd   : > { %s3468_s22 = smov %s2553_s24  ;;  %s3469_s23 = smov %s3472_s28 }
 0x1ce   : > { %s3470_s24 = smov %s3476_s29  ;;  %17 = sbr.rel (!%p15_p6) target bundleno = 5 (0x5), region = 86 }
 0x1d3   :  { %2050 = vsyncpa [#allocation4], 1 }
 0x1d4   :  { %2052 = vsyncpa [#allocation4 + $0x1], 1 }

</bundles_post_ra>
